<compile_context>
chip_gen: v6e
topology: v6e:2x2x1
jax: 0.10.0
libtpu: 0.0.40
codegen_flags: <defaults>
</compile_context>

<pallas_src>
import functools

import jax
import jax.numpy as jnp
from jax import lax
from jax.experimental import pallas as pl
from jax.experimental.pallas import tpu as pltpu

LANE = 128
SUBLANE = 8
_MIB = 1024 * 1024
# t_block is sized against this budget so the per-layer pipeline fits v7x's
# 64 MiB VMEM (v5e/v6e have 128 MiB, so it trivially fits there too).
_VMEM_BUDGET_BYTES = 40 * _MIB
# Explicit scoped-VMEM limit: above the v5e (16 MiB) / v6e (32 MiB) defaults,
# below the v7x 64 MiB physical ceiling.
_VMEM_LIMIT_CAP = 56 * _MIB


def _round_up(x, m):
    return (x + m - 1) // m * m


# ----------------------------------------------------------------------------
# Fused bidirectional LSTM recurrence kernel (one layer, both directions).
#   xpf/xpb  : (t_block, B, 4*Hp) bf16  precomputed x @ W_ih + (b_ih+b_hh), gate-padded
#   whhf/whhb: (Hp, 4*Hp)         bf16  hidden->gates weights (pre-transposed, padded)
#   yf/yb    : (t_block, B, Hp)   f32   per-direction hidden outputs
#   h*/c*    : (B, Hp)            f32   recurrent state, persisted across grid steps
# Forward uses time block t; backward uses mirrored block nb-1-t and walks it in
# reverse, so its outputs land at the correct absolute time with no post-reversal.
# ----------------------------------------------------------------------------
def _bilstm_kernel(xpf_ref, xpb_ref, whhf_ref, whhb_ref, yf_ref, yb_ref,
                   hf_sc, cf_sc, hb_sc, cb_sc):
    @pl.when(pl.program_id(0) == 0)
    def _init():
        hf_sc[...] = jnp.zeros_like(hf_sc)
        cf_sc[...] = jnp.zeros_like(cf_sc)
        hb_sc[...] = jnp.zeros_like(hb_sc)
        cb_sc[...] = jnp.zeros_like(cb_sc)

    tc = xpf_ref.shape[0]
    hp = hf_sc.shape[-1]

    def gates_to_state(pre, c_prev):
        # Hp is a multiple of 128 -> each gate slice is a lane-aligned vreg view.
        i_g = jax.nn.sigmoid(pre[:, 0 * hp:1 * hp])
        f_g = jax.nn.sigmoid(pre[:, 1 * hp:2 * hp])
        g_g = jnp.tanh(pre[:, 2 * hp:3 * hp])
        o_g = jax.nn.sigmoid(pre[:, 3 * hp:4 * hp])
        c_new = f_g * c_prev + i_g * g_g          # f32 state accumulation
        h_new = o_g * jnp.tanh(c_new)
        return h_new, c_new

    def step(k, carry):
        h_f, c_f, h_b, c_b = carry
        # Forward direction: local time k.  h is carried in vregs; only a bf16
        # view feeds the MXU (native bf16 pass, f32 accumulation).  Weights are
        # read from the ref inside the loop on purpose: that load sits off the
        # serial dependence chain and avoids pinning ~32 vregs on weights.
        pre_f = xpf_ref[k].astype(jnp.float32) + jnp.dot(
            h_f.astype(jnp.bfloat16), whhf_ref[...],
            preferred_element_type=jnp.float32)
        h_f, c_f = gates_to_state(pre_f, c_f)
        yf_ref[k] = h_f

        # Backward direction: local time tc-1-k of the mirrored block.
        kb = tc - 1 - k
        pre_b = xpb_ref[kb].astype(jnp.float32) + jnp.dot(
            h_b.astype(jnp.bfloat16), whhb_ref[...],
            preferred_element_type=jnp.float32)
        h_b, c_b = gates_to_state(pre_b, c_b)
        yb_ref[kb] = h_b
        return (h_f, c_f, h_b, c_b)

    # h/c live in the loop carry (vregs); VMEM scratch is touched exactly once
    # on entry (read) and once on exit (write) per grid step.
    carry0 = (hf_sc[...], cf_sc[...], hb_sc[...], cb_sc[...])
    h_f, c_f, h_b, c_b = lax.fori_loop(0, tc, step, carry0, unroll=2)
    hf_sc[...] = h_f
    cf_sc[...] = c_f
    hb_sc[...] = h_b
    cb_sc[...] = c_b


def bilstm_layer(xp_f, xp_b, whh_f, whh_b, *, t_block, vmem_limit_bytes):
    """xp_f/xp_b: (Tp, B, 4*Hp) bf16 projected inputs -> (y_f, y_b): (Tp, B, Hp) f32."""
    Tp, B, G = xp_f.shape
    Hp = whh_f.shape[0]
    nb = Tp // t_block

    fwd_map = lambda t: (t, 0, 0)
    bwd_map = lambda t: (nb - 1 - t, 0, 0)
    # Loop-invariant recurrent weights: single-buffered (no second VMEM copy,
    # no re-issued DMA per grid step).
    w_spec = pl.BlockSpec((Hp, G), lambda t: (0, 0), pipeline_mode=pl.Buffered(1))

    return pl.pallas_call(
        _bilstm_kernel,
        out_shape=(jax.ShapeDtypeStruct((Tp, B, Hp), jnp.float32),
                   jax.ShapeDtypeStruct((Tp, B, Hp), jnp.float32)),
        grid=(nb,),
        in_specs=[
            pl.BlockSpec((t_block, B, G), fwd_map),
            pl.BlockSpec((t_block, B, G), bwd_map),
            w_spec,
            w_spec,
        ],
        out_specs=(
            pl.BlockSpec((t_block, B, Hp), fwd_map),
            pl.BlockSpec((t_block, B, Hp), bwd_map),
        ),
        scratch_shapes=[pltpu.VMEM((B, Hp), jnp.float32)] * 4,
        compiler_params=pltpu.CompilerParams(
            dimension_semantics=("arbitrary",),   # time recurrence is serial
            vmem_limit_bytes=vmem_limit_bytes,
        ),
    )(xp_f, xp_b, whh_f, whh_b)


# ----------------------------------------------------------------------------
# VMEM-budget-driven t_block selection (per grid step, per layer):
#   double-buffered bf16 xp (2 dirs) + double-buffered f32 y (2 dirs)
#   + single-buffered bf16 weights (2 dirs) + f32 h/c scratch.
# ----------------------------------------------------------------------------
def _vmem_footprint_bytes(tb, Bp, Hp):
    xp = 2 * 2 * tb * Bp * (4 * Hp) * 2
    y = 2 * 2 * tb * Bp * Hp * 4
    w = 2 * Hp * (4 * Hp) * 2
    sc = 4 * Bp * Hp * 4
    return xp + y + w + sc


def _select_t_block(T, Bp, Hp, requested):
    tb = max(1, min(requested, T))
    while tb > 1 and _vmem_footprint_bytes(tb, Bp, Hp) > _VMEM_BUDGET_BYTES:
        tb = max(1, tb // 2)
    limit = min(_VMEM_LIMIT_CAP,
                max(32 * _MIB, 2 * _vmem_footprint_bytes(tb, Bp, Hp)))
    return tb, limit


# ----------------------------------------------------------------------------
# EncoderTXT forward (kernel path)
# ----------------------------------------------------------------------------
def encoder_txt_forward(input_ids, embed_w, layers, *, N, hidden_size, t_block=8):
    """input_ids: (bs, N, tlen) int32 -> (bs, N, tlen, hidden_size) f32."""
    emb = jnp.take(embed_w, input_ids, axis=0)           # (bs, N, tlen, D) gather glue
    bs, n, tlen, d = emb.shape
    assert n == N
    H = hidden_size // 2
    Hp = layers[0]["whh_f"].shape[0]

    # PyTorch batch_first=False quirk: dim0 (bs) = TIME, dim1 (tlen) = BATCH.
    # All N report slices share weights -> fold N into the batch dimension.
    T = bs
    B = n * tlen
    Bp = _round_up(B, SUBLANE)
    tb, vmem_limit = _select_t_block(T, Bp, Hp, t_block)
    Tp = _round_up(T, tb)

    x = emb.reshape(T, B, d)
    if Bp != B:
        x = jnp.pad(x, ((0, 0), (0, Bp - B), (0, 0)))

    y_f = y_b = None
    for li, p in enumerate(layers):
        # Hoisted batch-parallel input projection (bias folded in).  DEFAULT
        # precision (single bf16 MXU pass) per the perf review; the projected
        # stream is stored in bf16 to halve its HBM/DMA traffic into the kernel.
        if li == 0:
            x2 = x.reshape(T * Bp, d)
            xp_f = (jnp.dot(x2, p["wx_f"]) + p["b_f"]
                    ).astype(jnp.bfloat16).reshape(T, Bp, -1)
            xp_b = (jnp.dot(x2, p["wx_b"]) + p["b_b"]
                    ).astype(jnp.bfloat16).reshape(T, Bp, -1)
        else:
            # Consume previous layer's y_f / y_b separately (row-split W_ih) so the
            # (T,B,2H) concat never materializes between layers.
            yf2 = y_f[:T].reshape(T * Bp, Hp)
            yb2 = y_b[:T].reshape(T * Bp, Hp)
            xp_f = (jnp.dot(yf2, p["wx_ff"]) + jnp.dot(yb2, p["wx_fb"])
                    + p["b_f"]).astype(jnp.bfloat16).reshape(T, Bp, -1)
            xp_b = (jnp.dot(yf2, p["wx_bf"]) + jnp.dot(yb2, p["wx_bb"])
                    + p["b_b"]).astype(jnp.bfloat16).reshape(T, Bp, -1)
        # Zero-pad the time axis: with xp == 0 and zero initial state the LSTM
        # recurrence keeps h == c == 0 exactly through padded steps, so they
        # cannot perturb either direction's real states.
        if Tp != T:
            xp_f = jnp.pad(xp_f, ((0, Tp - T), (0, 0), (0, 0)))
            xp_b = jnp.pad(xp_b, ((0, Tp - T), (0, 0), (0, 0)))
        y_f, y_b = bilstm_layer(xp_f, xp_b, p["whh_f"], p["whh_b"],
                                t_block=tb, vmem_limit_bytes=vmem_limit)

    out = jnp.concatenate([y_f[:T, :B, :H], y_b[:T, :B, :H]], axis=-1)  # (T, B, 2H)
    return out.reshape(bs, n, tlen, hidden_size)


# ----------------------------------------------------------------------------
# Parameter construction: raw PyTorch-layout params + padded/packed kernel params.
# Gate k's H columns are placed at lane-aligned offset k*Hp (Hp = round_up(H,128)).
# TODO(synk): per-gate padding to 128 lanes is ~8x wasteful at H=16; for
# production either keep H a multiple of 128 or pack gates contiguously
# (4H -> round_up(4H,128)) and accept sub-lane gate slices in the kernel.
# ----------------------------------------------------------------------------
def _gate_pad_cols(w_t, H, Hp):
    rows = w_t.shape[0]
    out = jnp.zeros((rows, 4 * Hp), w_t.dtype)
    for g in range(4):
        out = out.at[:, g * Hp:g * Hp + H].set(w_t[:, g * H:(g + 1) * H])
    return out


def _row_pad(w, rows_p):
    return jnp.pad(w, ((0, rows_p - w.shape[0]), (0, 0)))


def make_params(key, vocab_size, embed_size, hidden_size, num_layers=2):
    H = hidden_size // 2
    Hp = _round_up(H, LANE)
    k = 1.0 / jnp.sqrt(jnp.float32(H))
    keys = jax.random.split(key, 1 + num_layers * 2 * 4)
    embed_w = jax.random.normal(keys[0], (vocab_size, embed_size), jnp.float32)

    raw_layers = []   # ((w_ih, w_hh, b) forward, (w_ih, w_hh, b) backward) per layer
    layers = []       # padded / preprocessed for the kernel path
    ki = 1
    in_size = embed_size
    for li in range(num_layers):
        raw_dirs = []
        for _direction in range(2):
            w_ih = jax.random.uniform(keys[ki + 0], (4 * H, in_size), jnp.float32, -k, k)
            w_hh = jax.random.uniform(keys[ki + 1], (4 * H, H), jnp.float32, -k, k)
            b_ih = jax.random.uniform(keys[ki + 2], (4 * H,), jnp.float32, -k, k)
            b_hh = jax.random.uniform(keys[ki + 3], (4 * H,), jnp.float32, -k, k)
            ki += 4
            raw_dirs.append((w_ih, w_hh, b_ih + b_hh))
        raw_layers.append(tuple(raw_dirs))

        p = {}
        for tag, (w_ih, w_hh, b) in zip(("f", "b"), raw_dirs):
            # bf16 recurrent weights: native MXU pass in the kernel.
            p["whh_" + tag] = _row_pad(_gate_pad_cols(w_hh.T, H, Hp), Hp
                                       ).astype(jnp.bfloat16)               # (Hp, 4Hp)
            p["b_" + tag] = _gate_pad_cols(b[None, :], H, Hp)[0]            # (4Hp,)
            wih_t = w_ih.T                                                  # (in, 4H)
            if li == 0:
                p["wx_" + tag] = _gate_pad_cols(wih_t, H, Hp)               # (D, 4Hp)
            else:
                # input of layer>=1 is [h_f | h_b]; split rows so no concat is needed
                p["wx_" + tag + "f"] = _row_pad(_gate_pad_cols(wih_t[:H], H, Hp), Hp)
                p["wx_" + tag + "b"] = _row_pad(_gate_pad_cols(wih_t[H:], H, Hp), Hp)
        layers.append(p)
        in_size = 2 * H
    return embed_w, layers, raw_layers


# ----------------------------------------------------------------------------
# Pure-JAX reference (raw PyTorch-layout weights, full f32 precision)
# ----------------------------------------------------------------------------
def _ref_lstm_dir(x, w_ih, w_hh, b, reverse):
    T, B, _ = x.shape
    H = w_hh.shape[1]
    h = jnp.zeros((B, H), jnp.float32)
    c = jnp.zeros((B, H), jnp.float32)
    ys = [None] * T
    order = range(T - 1, -1, -1) if reverse else range(T)
    hi = jax.lax.Precision.HIGHEST
    for t in order:
        gates = (jnp.dot(x[t], w_ih.T, precision=hi)
                 + jnp.dot(h, w_hh.T, precision=hi) + b)
        i_g = jax.nn.sigmoid(gates[:, :H])
        f_g = jax.nn.sigmoid(gates[:, H:2 * H])
        g_g = jnp.tanh(gates[:, 2 * H:3 * H])
        o_g = jax.nn.sigmoid(gates[:, 3 * H:])
        c = f_g * c + i_g * g_g
        h = o_g * jnp.tanh(c)
        ys[t] = h
    return jnp.stack(ys, axis=0)


def _ref_forward(input_ids, embed_w, raw_layers, N):
    emb = jnp.take(embed_w, input_ids, axis=0)
    bs, n, tlen, d = emb.shape
    out = emb.reshape(bs, n * tlen, d)
    for ((wih_f, whh_f, b_f), (wih_b, whh_b, b_b)) in raw_layers:
        y_f = _ref_lstm_dir(out, wih_f, whh_f, b_f, reverse=False)
        y_b = _ref_lstm_dir(out, wih_b, whh_b, b_b, reverse=True)
        out = jnp.concatenate([y_f, y_b], axis=-1)
    return out.reshape(bs, n, tlen, -1)


# ----------------------------------------------------------------------------
if __name__ == "__main__":
    vocab_size, embed_size, hidden_size, N = 50, 32, 32, 3   # module needs embed==hidden
    bs, tlen = 2, 8

    key = jax.random.PRNGKey(0)
    k_param, k_ids = jax.random.split(key)
    embed_w, layers, raw_layers = make_params(k_param, vocab_size, embed_size, hidden_size)

    input_ids = jax.random.randint(k_ids, (bs, N, tlen), 0, vocab_size, dtype=jnp.int32)

    fwd = jax.jit(functools.partial(encoder_txt_forward, N=N, hidden_size=hidden_size))
    out = jax.block_until_ready(fwd(input_ids, embed_w, layers))

    assert out.shape == (bs, N, tlen, hidden_size), out.shape
    assert out.dtype == jnp.float32

    ref = _ref_forward(input_ids, embed_w, raw_layers, N)
    # bf16 MXU operands (DEFAULT-precision projections, bf16 xp / W_hh) vs the
    # f32 HIGHEST-precision reference -> tolerance relaxed accordingly.
    assert jnp.allclose(out, ref, atol=3e-2, rtol=3e-2), float(jnp.max(jnp.abs(out - ref)))

    print("KERNEL_OK")
</pallas_src>

<mosaic_0001>
module attributes {stable_mosaic.version = 11 : i64} {
  func.func @_bilstm_kernel(%arg0: i32, %arg1: memref<2x24x512xbf16, #tpu.memory_space<vmem>>, %arg2: memref<2x24x512xbf16, #tpu.memory_space<vmem>>, %arg3: memref<128x512xbf16, #tpu.memory_space<vmem>>, %arg4: memref<128x512xbf16, #tpu.memory_space<vmem>>, %arg5: memref<2x24x128xf32, #tpu.memory_space<vmem>>, %arg6: memref<2x24x128xf32, #tpu.memory_space<vmem>>, %arg7: memref<24x128xf32, #tpu.memory_space<vmem>>, %arg8: memref<24x128xf32, #tpu.memory_space<vmem>>, %arg9: memref<24x128xf32, #tpu.memory_space<vmem>>, %arg10: memref<24x128xf32, #tpu.memory_space<vmem>>) attributes {dimension_semantics = [#tpu.dimension_semantics<arbitrary>], iteration_bounds = array<i64: 1>, scalar_prefetch = 0 : i64, scratch_operands = 4 : i64, tpu.core_type = #tpu.core_type<tc>, window_params = [{transform_indices = @transform_0, window_bounds = array<i64: 2, 24, 512>}, {transform_indices = @transform_1, window_bounds = array<i64: 2, 24, 512>}, {pipeline_mode = #tpu.pipeline_mode<synchronous>, transform_indices = @transform_2, window_bounds = array<i64: 128, 512>}, {pipeline_mode = #tpu.pipeline_mode<synchronous>, transform_indices = @transform_3, window_bounds = array<i64: 128, 512>}, {transform_indices = @transform_4, window_bounds = array<i64: 2, 24, 128>}, {transform_indices = @transform_5, window_bounds = array<i64: 2, 24, 128>}]} {
    %c0_i32 = arith.constant 0 : i32
    %0 = arith.cmpi eq, %arg0, %c0_i32 : i32
    %1 = arith.extui %0 : i1 to i32
    %c0_i32_0 = arith.constant 0 : i32
    %2 = arith.cmpi ne, %1, %c0_i32_0 : i32
    scf.if %2 {
      %cst_58 = arith.constant 0.000000e+00 : f32
      %161 = vector.broadcast %cst_58 : f32 to vector<24x128xf32>
      %c0_59 = arith.constant 0 : index
      %c0_60 = arith.constant 0 : index
      %162 = vector.load %arg7[%c0_59, %c0_60] : memref<24x128xf32, #tpu.memory_space<vmem>>, vector<24x128xf32>
      tpu.vector_store %arg7[%c0_59, %c0_60], %161 {strides = array<i32>} : memref<24x128xf32, #tpu.memory_space<vmem>>, vector<24x128xf32>,
      %cst_61 = arith.constant 0.000000e+00 : f32
      %163 = vector.broadcast %cst_61 : f32 to vector<24x128xf32>
      %c0_62 = arith.constant 0 : index
      %c0_63 = arith.constant 0 : index
      %164 = vector.load %arg8[%c0_62, %c0_63] : memref<24x128xf32, #tpu.memory_space<vmem>>, vector<24x128xf32>
      tpu.vector_store %arg8[%c0_62, %c0_63], %163 {strides = array<i32>} : memref<24x128xf32, #tpu.memory_space<vmem>>, vector<24x128xf32>,
      %cst_64 = arith.constant 0.000000e+00 : f32
      %165 = vector.broadcast %cst_64 : f32 to vector<24x128xf32>
      %c0_65 = arith.constant 0 : index
      %c0_66 = arith.constant 0 : index
      %166 = vector.load %arg9[%c0_65, %c0_66] : memref<24x128xf32, #tpu.memory_space<vmem>>, vector<24x128xf32>
      tpu.vector_store %arg9[%c0_65, %c0_66], %165 {strides = array<i32>} : memref<24x128xf32, #tpu.memory_space<vmem>>, vector<24x128xf32>,
      %cst_67 = arith.constant 0.000000e+00 : f32
      %167 = vector.broadcast %cst_67 : f32 to vector<24x128xf32>
      %c0_68 = arith.constant 0 : index
      %c0_69 = arith.constant 0 : index
      %168 = vector.load %arg10[%c0_68, %c0_69] : memref<24x128xf32, #tpu.memory_space<vmem>>, vector<24x128xf32>
      tpu.vector_store %arg10[%c0_68, %c0_69], %167 {strides = array<i32>} : memref<24x128xf32, #tpu.memory_space<vmem>>, vector<24x128xf32>,
    } else {
    }
    %c0 = arith.constant 0 : index
    %c0_1 = arith.constant 0 : index
    %3 = vector.load %arg7[%c0, %c0_1] : memref<24x128xf32, #tpu.memory_space<vmem>>, vector<24x128xf32>
    %c0_2 = arith.constant 0 : index
    %c0_3 = arith.constant 0 : index
    %4 = vector.load %arg8[%c0_2, %c0_3] : memref<24x128xf32, #tpu.memory_space<vmem>>, vector<24x128xf32>
    %c0_4 = arith.constant 0 : index
    %c0_5 = arith.constant 0 : index
    %5 = vector.load %arg9[%c0_4, %c0_5] : memref<24x128xf32, #tpu.memory_space<vmem>>, vector<24x128xf32>
    %c0_6 = arith.constant 0 : index
    %c0_7 = arith.constant 0 : index
    %6 = vector.load %arg10[%c0_6, %c0_7] : memref<24x128xf32, #tpu.memory_space<vmem>>, vector<24x128xf32>
    %c0_i32_8 = arith.constant 0 : i32
    %7 = arith.index_cast %c0_i32_8 : i32 to index
    %c0_9 = arith.constant 0 : index
    %c0_10 = arith.constant 0 : index
    %8 = vector.load %arg1[%7, %c0_9, %c0_10] : memref<2x24x512xbf16, #tpu.memory_space<vmem>>, vector<1x24x512xbf16>
    %9 = vector.shape_cast %8 : vector<1x24x512xbf16> to vector<24x512xbf16>
    %10 = arith.extf %9 : vector<24x512xbf16> to vector<24x512xf32>
    %11 = arith.truncf %3 : vector<24x128xf32> to vector<24x128xbf16>
    %c0_11 = arith.constant 0 : index
    %c0_12 = arith.constant 0 : index
    %12 = vector.load %arg3[%c0_11, %c0_12] : memref<128x512xbf16, #tpu.memory_space<vmem>>, vector<128x512xbf16>
    %cst = arith.constant dense<0.000000e+00> : vector<24x512xf32>
    %13 = tpu.matmul %11, %12, %cst {dimension_numbers = #tpu.dot_dimension_numbers<[1], [0], [0], [1], [0, 0, 1, 1], [], []>} : vector<24x128xbf16>, vector<128x512xbf16>, vector<24x512xf32> -> vector<24x512xf32>
    %14 = arith.addf %10, %13 : vector<24x512xf32>
    %15 = vector.extract_strided_slice %14 {offsets = [0, 0], sizes = [24, 128], strides = [1, 1]} : vector<24x512xf32> to vector<24x128xf32>
    %16 = arith.negf %15 : vector<24x128xf32>
    %17 = math.exp %16 : vector<24x128xf32>
    %cst_13 = arith.constant 1.000000e+00 : f32
    %18 = vector.broadcast %cst_13 : f32 to vector<24x128xf32>
    %19 = arith.addf %18, %17 : vector<24x128xf32>
    %20 = arith.divf %18, %19 : vector<24x128xf32>
    %21 = vector.extract_strided_slice %14 {offsets = [0, 128], sizes = [24, 128], strides = [1, 1]} : vector<24x512xf32> to vector<24x128xf32>
    %22 = arith.negf %21 : vector<24x128xf32>
    %23 = math.exp %22 : vector<24x128xf32>
    %cst_14 = arith.constant 1.000000e+00 : f32
    %24 = vector.broadcast %cst_14 : f32 to vector<24x128xf32>
    %25 = arith.addf %24, %23 : vector<24x128xf32>
    %26 = arith.divf %24, %25 : vector<24x128xf32>
    %27 = vector.extract_strided_slice %14 {offsets = [0, 256], sizes = [24, 128], strides = [1, 1]} : vector<24x512xf32> to vector<24x128xf32>
    %28 = math.tanh %27 : vector<24x128xf32>
    %29 = vector.extract_strided_slice %14 {offsets = [0, 384], sizes = [24, 128], strides = [1, 1]} : vector<24x512xf32> to vector<24x128xf32>
    %30 = arith.negf %29 : vector<24x128xf32>
    %31 = math.exp %30 : vector<24x128xf32>
    %cst_15 = arith.constant 1.000000e+00 : f32
    %32 = vector.broadcast %cst_15 : f32 to vector<24x128xf32>
    %33 = arith.addf %32, %31 : vector<24x128xf32>
    %34 = arith.divf %32, %33 : vector<24x128xf32>
    %35 = arith.mulf %26, %4 : vector<24x128xf32>
    %36 = arith.mulf %20, %28 : vector<24x128xf32>
    %37 = arith.addf %35, %36 : vector<24x128xf32>
    %38 = math.tanh %37 : vector<24x128xf32>
    %39 = arith.mulf %34, %38 : vector<24x128xf32>
    %40 = arith.index_cast %c0_i32_8 : i32 to index
    %c0_16 = arith.constant 0 : index
    %c0_17 = arith.constant 0 : index
    %41 = vector.load %arg5[%40, %c0_16, %c0_17] : memref<2x24x128xf32, #tpu.memory_space<vmem>>, vector<1x24x128xf32>
    %42 = vector.shape_cast %41 : vector<1x24x128xf32> to vector<24x128xf32>
    %43 = vector.shape_cast %39 : vector<24x128xf32> to vector<1x24x128xf32>
    tpu.vector_store %arg5[%40, %c0_16, %c0_17], %43 {strides = array<i32>} : memref<2x24x128xf32, #tpu.memory_space<vmem>>, vector<1x24x128xf32>,
    %c1_i32 = arith.constant 1 : i32
    %44 = arith.subi %c1_i32, %c0_i32_8 : i32
    %45 = arith.index_cast %44 : i32 to index
    %c0_18 = arith.constant 0 : index
    %c0_19 = arith.constant 0 : index
    %46 = vector.load %arg2[%45, %c0_18, %c0_19] : memref<2x24x512xbf16, #tpu.memory_space<vmem>>, vector<1x24x512xbf16>
    %47 = vector.shape_cast %46 : vector<1x24x512xbf16> to vector<24x512xbf16>
    %48 = arith.extf %47 : vector<24x512xbf16> to vector<24x512xf32>
    %49 = arith.truncf %5 : vector<24x128xf32> to vector<24x128xbf16>
    %c0_20 = arith.constant 0 : index
    %c0_21 = arith.constant 0 : index
    %50 = vector.load %arg4[%c0_20, %c0_21] : memref<128x512xbf16, #tpu.memory_space<vmem>>, vector<128x512xbf16>
    %cst_22 = arith.constant dense<0.000000e+00> : vector<24x512xf32>
    %51 = tpu.matmul %49, %50, %cst_22 {dimension_numbers = #tpu.dot_dimension_numbers<[1], [0], [0], [1], [0, 0, 1, 1], [], []>} : vector<24x128xbf16>, vector<128x512xbf16>, vector<24x512xf32> -> vector<24x512xf32>
    %52 = arith.addf %48, %51 : vector<24x512xf32>
    %53 = vector.extract_strided_slice %52 {offsets = [0, 0], sizes = [24, 128], strides = [1, 1]} : vector<24x512xf32> to vector<24x128xf32>
    %54 = arith.negf %53 : vector<24x128xf32>
    %55 = math.exp %54 : vector<24x128xf32>
    %cst_23 = arith.constant 1.000000e+00 : f32
    %56 = vector.broadcast %cst_23 : f32 to vector<24x128xf32>
    %57 = arith.addf %56, %55 : vector<24x128xf32>
    %58 = arith.divf %56, %57 : vector<24x128xf32>
    %59 = vector.extract_strided_slice %52 {offsets = [0, 128], sizes = [24, 128], strides = [1, 1]} : vector<24x512xf32> to vector<24x128xf32>
    %60 = arith.negf %59 : vector<24x128xf32>
    %61 = math.exp %60 : vector<24x128xf32>
    %cst_24 = arith.constant 1.000000e+00 : f32
    %62 = vector.broadcast %cst_24 : f32 to vector<24x128xf32>
    %63 = arith.addf %62, %61 : vector<24x128xf32>
    %64 = arith.divf %62, %63 : vector<24x128xf32>
    %65 = vector.extract_strided_slice %52 {offsets = [0, 256], sizes = [24, 128], strides = [1, 1]} : vector<24x512xf32> to vector<24x128xf32>
    %66 = math.tanh %65 : vector<24x128xf32>
    %67 = vector.extract_strided_slice %52 {offsets = [0, 384], sizes = [24, 128], strides = [1, 1]} : vector<24x512xf32> to vector<24x128xf32>
    %68 = arith.negf %67 : vector<24x128xf32>
    %69 = math.exp %68 : vector<24x128xf32>
    %cst_25 = arith.constant 1.000000e+00 : f32
    %70 = vector.broadcast %cst_25 : f32 to vector<24x128xf32>
    %71 = arith.addf %70, %69 : vector<24x128xf32>
    %72 = arith.divf %70, %71 : vector<24x128xf32>
    %73 = arith.mulf %64, %6 : vector<24x128xf32>
    %74 = arith.mulf %58, %66 : vector<24x128xf32>
    %75 = arith.addf %73, %74 : vector<24x128xf32>
    %76 = math.tanh %75 : vector<24x128xf32>
    %77 = arith.mulf %72, %76 : vector<24x128xf32>
    %78 = arith.index_cast %44 : i32 to index
    %c0_26 = arith.constant 0 : index
    %c0_27 = arith.constant 0 : index
    %79 = vector.load %arg6[%78, %c0_26, %c0_27] : memref<2x24x128xf32, #tpu.memory_space<vmem>>, vector<1x24x128xf32>
    %80 = vector.shape_cast %79 : vector<1x24x128xf32> to vector<24x128xf32>
    %81 = vector.shape_cast %77 : vector<24x128xf32> to vector<1x24x128xf32>
    tpu.vector_store %arg6[%78, %c0_26, %c0_27], %81 {strides = array<i32>} : memref<2x24x128xf32, #tpu.memory_space<vmem>>, vector<1x24x128xf32>,
    %c1_i32_28 = arith.constant 1 : i32
    %82 = arith.index_cast %c1_i32_28 : i32 to index
    %c0_29 = arith.constant 0 : index
    %c0_30 = arith.constant 0 : index
    %83 = vector.load %arg1[%82, %c0_29, %c0_30] : memref<2x24x512xbf16, #tpu.memory_space<vmem>>, vector<1x24x512xbf16>
    %84 = vector.shape_cast %83 : vector<1x24x512xbf16> to vector<24x512xbf16>
    %85 = arith.extf %84 : vector<24x512xbf16> to vector<24x512xf32>
    %86 = arith.truncf %39 : vector<24x128xf32> to vector<24x128xbf16>
    %c0_31 = arith.constant 0 : index
    %c0_32 = arith.constant 0 : index
    %87 = vector.load %arg3[%c0_31, %c0_32] : memref<128x512xbf16, #tpu.memory_space<vmem>>, vector<128x512xbf16>
    %cst_33 = arith.constant dense<0.000000e+00> : vector<24x512xf32>
    %88 = tpu.matmul %86, %87, %cst_33 {dimension_numbers = #tpu.dot_dimension_numbers<[1], [0], [0], [1], [0, 0, 1, 1], [], []>} : vector<24x128xbf16>, vector<128x512xbf16>, vector<24x512xf32> -> vector<24x512xf32>
    %89 = arith.addf %85, %88 : vector<24x512xf32>
    %90 = vector.extract_strided_slice %89 {offsets = [0, 0], sizes = [24, 128], strides = [1, 1]} : vector<24x512xf32> to vector<24x128xf32>
    %91 = arith.negf %90 : vector<24x128xf32>
    %92 = math.exp %91 : vector<24x128xf32>
    %cst_34 = arith.constant 1.000000e+00 : f32
    %93 = vector.broadcast %cst_34 : f32 to vector<24x128xf32>
    %94 = arith.addf %93, %92 : vector<24x128xf32>
    %95 = arith.divf %93, %94 : vector<24x128xf32>
    %96 = vector.extract_strided_slice %89 {offsets = [0, 128], sizes = [24, 128], strides = [1, 1]} : vector<24x512xf32> to vector<24x128xf32>
    %97 = arith.negf %96 : vector<24x128xf32>
    %98 = math.exp %97 : vector<24x128xf32>
    %cst_35 = arith.constant 1.000000e+00 : f32
    %99 = vector.broadcast %cst_35 : f32 to vector<24x128xf32>
    %100 = arith.addf %99, %98 : vector<24x128xf32>
    %101 = arith.divf %99, %100 : vector<24x128xf32>
    %102 = vector.extract_strided_slice %89 {offsets = [0, 256], sizes = [24, 128], strides = [1, 1]} : vector<24x512xf32> to vector<24x128xf32>
    %103 = math.tanh %102 : vector<24x128xf32>
    %104 = vector.extract_strided_slice %89 {offsets = [0, 384], sizes = [24, 128], strides = [1, 1]} : vector<24x512xf32> to vector<24x128xf32>
    %105 = arith.negf %104 : vector<24x128xf32>
    %106 = math.exp %105 : vector<24x128xf32>
    %cst_36 = arith.constant 1.000000e+00 : f32
    %107 = vector.broadcast %cst_36 : f32 to vector<24x128xf32>
    %108 = arith.addf %107, %106 : vector<24x128xf32>
    %109 = arith.divf %107, %108 : vector<24x128xf32>
    %110 = arith.mulf %101, %37 : vector<24x128xf32>
    %111 = arith.mulf %95, %103 : vector<24x128xf32>
    %112 = arith.addf %110, %111 : vector<24x128xf32>
    %113 = math.tanh %112 : vector<24x128xf32>
    %114 = arith.mulf %109, %113 : vector<24x128xf32>
    %115 = arith.index_cast %c1_i32_28 : i32 to index
    %c0_37 = arith.constant 0 : index
    %c0_38 = arith.constant 0 : index
    %116 = vector.load %arg5[%115, %c0_37, %c0_38] : memref<2x24x128xf32, #tpu.memory_space<vmem>>, vector<1x24x128xf32>
    %117 = vector.shape_cast %116 : vector<1x24x128xf32> to vector<24x128xf32>
    %118 = vector.shape_cast %114 : vector<24x128xf32> to vector<1x24x128xf32>
    tpu.vector_store %arg5[%115, %c0_37, %c0_38], %118 {strides = array<i32>} : memref<2x24x128xf32, #tpu.memory_space<vmem>>, vector<1x24x128xf32>,
    %c1_i32_39 = arith.constant 1 : i32
    %119 = arith.subi %c1_i32_39, %c1_i32_28 : i32
    %120 = arith.index_cast %119 : i32 to index
    %c0_40 = arith.constant 0 : index
    %c0_41 = arith.constant 0 : index
    %121 = vector.load %arg2[%120, %c0_40, %c0_41] : memref<2x24x512xbf16, #tpu.memory_space<vmem>>, vector<1x24x512xbf16>
    %122 = vector.shape_cast %121 : vector<1x24x512xbf16> to vector<24x512xbf16>
    %123 = arith.extf %122 : vector<24x512xbf16> to vector<24x512xf32>
    %124 = arith.truncf %77 : vector<24x128xf32> to vector<24x128xbf16>
    %c0_42 = arith.constant 0 : index
    %c0_43 = arith.constant 0 : index
    %125 = vector.load %arg4[%c0_42, %c0_43] : memref<128x512xbf16, #tpu.memory_space<vmem>>, vector<128x512xbf16>
    %cst_44 = arith.constant dense<0.000000e+00> : vector<24x512xf32>
    %126 = tpu.matmul %124, %125, %cst_44 {dimension_numbers = #tpu.dot_dimension_numbers<[1], [0], [0], [1], [0, 0, 1, 1], [], []>} : vector<24x128xbf16>, vector<128x512xbf16>, vector<24x512xf32> -> vector<24x512xf32>
    %127 = arith.addf %123, %126 : vector<24x512xf32>
    %128 = vector.extract_strided_slice %127 {offsets = [0, 0], sizes = [24, 128], strides = [1, 1]} : vector<24x512xf32> to vector<24x128xf32>
    %129 = arith.negf %128 : vector<24x128xf32>
    %130 = math.exp %129 : vector<24x128xf32>
    %cst_45 = arith.constant 1.000000e+00 : f32
    %131 = vector.broadcast %cst_45 : f32 to vector<24x128xf32>
    %132 = arith.addf %131, %130 : vector<24x128xf32>
    %133 = arith.divf %131, %132 : vector<24x128xf32>
    %134 = vector.extract_strided_slice %127 {offsets = [0, 128], sizes = [24, 128], strides = [1, 1]} : vector<24x512xf32> to vector<24x128xf32>
    %135 = arith.negf %134 : vector<24x128xf32>
    %136 = math.exp %135 : vector<24x128xf32>
    %cst_46 = arith.constant 1.000000e+00 : f32
    %137 = vector.broadcast %cst_46 : f32 to vector<24x128xf32>
    %138 = arith.addf %137, %136 : vector<24x128xf32>
    %139 = arith.divf %137, %138 : vector<24x128xf32>
    %140 = vector.extract_strided_slice %127 {offsets = [0, 256], sizes = [24, 128], strides = [1, 1]} : vector<24x512xf32> to vector<24x128xf32>
    %141 = math.tanh %140 : vector<24x128xf32>
    %142 = vector.extract_strided_slice %127 {offsets = [0, 384], sizes = [24, 128], strides = [1, 1]} : vector<24x512xf32> to vector<24x128xf32>
    %143 = arith.negf %142 : vector<24x128xf32>
    %144 = math.exp %143 : vector<24x128xf32>
    %cst_47 = arith.constant 1.000000e+00 : f32
    %145 = vector.broadcast %cst_47 : f32 to vector<24x128xf32>
    %146 = arith.addf %145, %144 : vector<24x128xf32>
    %147 = arith.divf %145, %146 : vector<24x128xf32>
    %148 = arith.mulf %139, %75 : vector<24x128xf32>
    %149 = arith.mulf %133, %141 : vector<24x128xf32>
    %150 = arith.addf %148, %149 : vector<24x128xf32>
    %151 = math.tanh %150 : vector<24x128xf32>
    %152 = arith.mulf %147, %151 : vector<24x128xf32>
    %153 = arith.index_cast %119 : i32 to index
    %c0_48 = arith.constant 0 : index
    %c0_49 = arith.constant 0 : index
    %154 = vector.load %arg6[%153, %c0_48, %c0_49] : memref<2x24x128xf32, #tpu.memory_space<vmem>>, vector<1x24x128xf32>
    %155 = vector.shape_cast %154 : vector<1x24x128xf32> to vector<24x128xf32>
    %156 = vector.shape_cast %152 : vector<24x128xf32> to vector<1x24x128xf32>
    tpu.vector_store %arg6[%153, %c0_48, %c0_49], %156 {strides = array<i32>} : memref<2x24x128xf32, #tpu.memory_space<vmem>>, vector<1x24x128xf32>,
    %c2_i32 = arith.constant 2 : i32
    %c0_50 = arith.constant 0 : index
    %c0_51 = arith.constant 0 : index
    %157 = vector.load %arg7[%c0_50, %c0_51] : memref<24x128xf32, #tpu.memory_space<vmem>>, vector<24x128xf32>
    tpu.vector_store %arg7[%c0_50, %c0_51], %114 {strides = array<i32>} : memref<24x128xf32, #tpu.memory_space<vmem>>, vector<24x128xf32>,
    %c0_52 = arith.constant 0 : index
    %c0_53 = arith.constant 0 : index
    %158 = vector.load %arg8[%c0_52, %c0_53] : memref<24x128xf32, #tpu.memory_space<vmem>>, vector<24x128xf32>
    tpu.vector_store %arg8[%c0_52, %c0_53], %112 {strides = array<i32>} : memref<24x128xf32, #tpu.memory_space<vmem>>, vector<24x128xf32>,
    %c0_54 = arith.constant 0 : index
    %c0_55 = arith.constant 0 : index
    %159 = vector.load %arg9[%c0_54, %c0_55] : memref<24x128xf32, #tpu.memory_space<vmem>>, vector<24x128xf32>
    tpu.vector_store %arg9[%c0_54, %c0_55], %152 {strides = array<i32>} : memref<24x128xf32, #tpu.memory_space<vmem>>, vector<24x128xf32>,
    %c0_56 = arith.constant 0 : index
    %c0_57 = arith.constant 0 : index
    %160 = vector.load %arg10[%c0_56, %c0_57] : memref<24x128xf32, #tpu.memory_space<vmem>>, vector<24x128xf32>
    tpu.vector_store %arg10[%c0_56, %c0_57], %150 {strides = array<i32>} : memref<24x128xf32, #tpu.memory_space<vmem>>, vector<24x128xf32>,
    return
  }
  func.func @transform_0(%arg0: i32) -> (i32, i32, i32) {
    %c0_i32 = arith.constant 0 : i32
    %c0_i32_0 = arith.constant 0 : i32
    %c0_i32_1 = arith.constant 0 : i32
    return %arg0, %c0_i32, %c0_i32_0 : i32, i32, i32
  }
  func.func @transform_1(%arg0: i32) -> (i32, i32, i32) {
    %c0_i32 = arith.constant 0 : i32
    %0 = arith.subi %c0_i32, %arg0 : i32
    %c0_i32_0 = arith.constant 0 : i32
    %c0_i32_1 = arith.constant 0 : i32
    %c0_i32_2 = arith.constant 0 : i32
    return %0, %c0_i32_0, %c0_i32_1 : i32, i32, i32
  }
  func.func @transform_2(%arg0: i32) -> (i32, i32) {
    %c0_i32 = arith.constant 0 : i32
    %c0_i32_0 = arith.constant 0 : i32
    %c0_i32_1 = arith.constant 0 : i32
    return %c0_i32, %c0_i32_0 : i32, i32
  }
  func.func @transform_3(%arg0: i32) -> (i32, i32) {
    %c0_i32 = arith.constant 0 : i32
    %c0_i32_0 = arith.constant 0 : i32
    %c0_i32_1 = arith.constant 0 : i32
    return %c0_i32, %c0_i32_0 : i32, i32
  }
  func.func @transform_4(%arg0: i32) -> (i32, i32, i32) {
    %c0_i32 = arith.constant 0 : i32
    %c0_i32_0 = arith.constant 0 : i32
    %c0_i32_1 = arith.constant 0 : i32
    return %arg0, %c0_i32, %c0_i32_0 : i32, i32, i32
  }
  func.func @transform_5(%arg0: i32) -> (i32, i32, i32) {
    %c0_i32 = arith.constant 0 : i32
    %0 = arith.subi %c0_i32, %arg0 : i32
    %c0_i32_0 = arith.constant 0 : i32
    %c0_i32_1 = arith.constant 0 : i32
    %c0_i32_2 = arith.constant 0 : i32
    return %0, %c0_i32_0, %c0_i32_1 : i32, i32, i32
  }
}

</mosaic_0001>

<bundles_post_ra>
// kernel: encoder_txt_forward.2
= control target key start
LH: loop header
LB: loop body
LE: loop exit
PB: predicated region body
PF: predicated region fallthrough
CT: control target
= control target key end

     0   :  { %v2870_v1 = vmov 0   ;;  %v2872_v37 = vmov 0.0|0.0   ;;  %s2864_s2 = inlined_call_operand.vmem [shape: bf16[128,512], index: 2, kind: input, shape index: {}]   ;;  %s2865_s3 = inlined_call_operand.vmem [shape: bf16[128,512], index: 3, kind: input, shape index: {}]   ;;  %s2866_s0 = inlined_call_operand.vmem [shape: bf16[2,24,512], index: 0, kind: input, shape index: {}]   ;;  %s2867_s1 = inlined_call_operand.vmem [shape: bf16[2,24,512], index: 1, kind: input, shape index: {}]   ;;  %s2868_s4 = inlined_call_operand.vmem [shape: f32[2,24,128], index: 4, kind: output, shape index: {0}]   ;;  %s2869_s5 = inlined_call_operand.vmem [shape: f32[2,24,128], index: 5, kind: output, shape index: {1}]  }
   0x1   :  { %v2254_v0 = vld [vmem:[%s2864_s2 + $0xe4] ss:$16 sps:$4 sm:$0xff]   ;;  %333 = vmatprep.mubr.bf16.mxu0 %v2870_v1  ;;  %384 = vmatprep.mubr.bf16.mxu1 %v2870_v1  ;;  %v2261_v2 = vld [vmem:[%s2864_s2 + $0xe0] ss:$16 sps:$4 sm:$0xff]   ;;  %v2284_v6 = vld [vmem:[%s2864_s2 + $0xec] ss:$16 sps:$4 sm:$0xff]  }
   0x2   :  { %301 = vmatprep.subr.bf16.mxu0 %v2254_v0  ;;  %v2267_v3 = vld [vmem:[%s2864_s2 + $0xc4] ss:$16 sps:$4 sm:$0xff]   ;;  %v2273_v4 = vld [vmem:[%s2864_s2 + $0xc0] ss:$16 sps:$4 sm:$0xff]   ;;  %v2289_v7 = vld [vmem:[%s2864_s2 + $0xe8] ss:$16 sps:$4 sm:$0xff]   ;;  %352 = vmatprep.subr.bf16.mxu1 %v2284_v6 }
   0x3   :  { %302 = vmatpush1.bf16.msra.mxu0 %v2261_v2  ;;  %v2279_v5 = vld [vmem:[%s2864_s2 + $0xa4] ss:$16 sps:$4 sm:$0xff]   ;;  %v2295_v8 = vld [vmem:[%s2864_s2 + $0xa0] ss:$16 sps:$4 sm:$0xff]   ;;  %353 = vmatpush1.bf16.msra.mxu1 %v2289_v7  ;;  %v2308_v10 = vld [vmem:[%s2864_s2 + $0xcc] ss:$16 sps:$4 sm:$0xff]  }
   0x4   :  { %303 = vmatprep.subr.bf16.mxu0 %v2267_v3  ;;  %v2302_v9 = vld [vmem:[%s2864_s2 + $0x84] ss:$16 sps:$4 sm:$0xff]   ;;  %v2313_v11 = vld [vmem:[%s2864_s2 + $0xc8] ss:$16 sps:$4 sm:$0xff]   ;;  %354 = vmatprep.subr.bf16.mxu1 %v2308_v10  ;;  %v2320_v12 = vld [vmem:[%s2864_s2 + $0x80] ss:$16 sps:$4 sm:$0xff]  }
   0x5   :  { %v2325_v13 = vld [vmem:[%s2864_s2 + $0x64] ss:$16 sps:$4 sm:$0xff]   ;;  %v2330_v14 = vld [vmem:[%s2864_s2 + $0xac] ss:$16 sps:$4 sm:$0xff]   ;;  %v2337_v15 = vld [vmem:[%s2864_s2 + $0xa8] ss:$16 sps:$4 sm:$0xff]  }
   0x6   :  { %v2343_v16 = vld [vmem:[%s2864_s2 + $0x8c] ss:$16 sps:$4 sm:$0xff]   ;;  %v2349_v17 = vld [vmem:[%s2864_s2 + $0x60] ss:$16 sps:$4 sm:$0xff]   ;;  %v2355_v18 = vld [vmem:[%s2864_s2 + $0x44] ss:$16 sps:$4 sm:$0xff]  }
   0x7   :  { %304 = vmatpush1.bf16.msra.mxu0 %v2273_v4  ;;  %355 = vmatpush1.bf16.msra.mxu1 %v2313_v11  ;;  %v2361_v19 = vld [vmem:[%s2864_s2 + $0x88] ss:$16 sps:$4 sm:$0xff]   ;;  %v2367_v20 = vld [vmem:[%s2864_s2 + $0x6c] ss:$16 sps:$4 sm:$0xff]   ;;  %v2373_v21 = vld [vmem:[%s2864_s2 + $0x40] ss:$16 sps:$4 sm:$0xff]  }
   0x8   :  { %305 = vmatprep.subr.bf16.mxu0 %v2279_v5  ;;  %356 = vmatprep.subr.bf16.mxu1 %v2330_v14  ;;  %v2378_v22 = vld [vmem:[%s2864_s2 + $0x24] ss:$16 sps:$4 sm:$0xff]   ;;  %v2385_v23 = vld [vmem:[%s2864_s2 + $0x68] ss:$16 sps:$4 sm:$0xff]   ;;  %v2391_v24 = vld [vmem:[%s2864_s2 + $0x4c] ss:$16 sps:$4 sm:$0xff]  }
   0x9   :  { %v2397_v25 = vld [vmem:[%s2864_s2 + $0x20] ss:$16 sps:$4 sm:$0xff]   ;;  %v2403_v26 = vld [vmem:[%s2864_s2 + $0x4] ss:$16 sps:$4 sm:$0xff]   ;;  %v2409_v27 = vld [vmem:[%s2864_s2 + $0x48] ss:$16 sps:$4 sm:$0xff]  }
   0xa   :  { %v2415_v28 = vld [vmem:[%s2864_s2 + $0x2c] ss:$16 sps:$4 sm:$0xff]   ;;  %v2421_v29 = vld [vmem:[%s2864_s2] ss:$16 sps:$4 sm:$0xff]   ;;  %v2426_v30 = vld [vmem:[%s2865_s3 + $0xe4] ss:$16 sps:$4 sm:$0xff]  }
   0xb   :  { %306 = vmatpush1.bf16.msra.mxu0 %v2295_v8  ;;  %357 = vmatpush1.bf16.msra.mxu1 %v2337_v15  ;;  %v2433_v31 = vld [vmem:[%s2864_s2 + $0x28] ss:$16 sps:$4 sm:$0xff]   ;;  %v2439_v32 = vld [vmem:[%s2864_s2 + $0xc] ss:$16 sps:$4 sm:$0xff]   ;;  %v2445_v33 = vld [vmem:[%s2865_s3 + $0xe0] ss:$16 sps:$4 sm:$0xff]  }
   0xc   :  { %307 = vmatprep.subr.bf16.mxu0 %v2302_v9  ;;  %358 = vmatprep.subr.bf16.mxu1 %v2343_v16  ;;  %v2450_v34 = vld [vmem:[%s2865_s3 + $0xc4] ss:$16 sps:$4 sm:$0xff]   ;;  %v2457_v35 = vld [vmem:[%s2864_s2 + $0x8] ss:$16 sps:$4 sm:$0xff]   ;;  %v2463_v36 = vld [vmem:[%s2865_s3 + $0xec] ss:$16 sps:$4 sm:$0xff]  }
   0xd   :  { %v2470_v38 = vld [vmem:[%s2865_s3 + $0xc0] ss:$16 sps:$4 sm:$0xff]   ;;  %v2475_v39 = vld [vmem:[%s2865_s3 + $0xa4] ss:$16 sps:$4 sm:$0xff]   ;;  %v2483_v40 = vld [vmem:[%s2865_s3 + $0xe8] ss:$16 sps:$4 sm:$0xff]  }
   0xe   :  { %v2489_v41 = vld [vmem:[%s2865_s3 + $0xcc] ss:$16 sps:$4 sm:$0xff]   ;;  %v2495_v42 = vld [vmem:[%s2865_s3 + $0xa0] ss:$16 sps:$4 sm:$0xff]   ;;  %v2500_v43 = vld [vmem:[%s2865_s3 + $0x84] ss:$16 sps:$4 sm:$0xff]  }
   0xf   :  { %308 = vmatpush1.bf16.msra.mxu0 %v2320_v12  ;;  %359 = vmatpush1.bf16.msra.mxu1 %v2361_v19  ;;  %v2508_v44 = vld [vmem:[%s2865_s3 + $0xc8] ss:$16 sps:$4 sm:$0xff]   ;;  %v2514_v45 = vld [vmem:[%s2865_s3 + $0xac] ss:$16 sps:$4 sm:$0xff]   ;;  %v2522_v46 = vld [vmem:[%s2865_s3 + $0x80] ss:$16 sps:$4 sm:$0xff]  }
  0x10   :  { %309 = vmatprep.subr.bf16.mxu0 %v2325_v13  ;;  %360 = vmatprep.subr.bf16.mxu1 %v2367_v20  ;;  %v2529_v47 = vld [vmem:[%s2865_s3 + $0x64] ss:$16 sps:$4 sm:$0xff]   ;;  %v2535_v48 = vld [vmem:[%s2865_s3 + $0xa8] ss:$16 sps:$4 sm:$0xff]   ;;  %v2541_v49 = vld [vmem:[%s2865_s3 + $0x8c] ss:$16 sps:$4 sm:$0xff]  }
  0x11   :  { %v2547_v50 = vld [vmem:[%s2865_s3 + $0x60] ss:$16 sps:$4 sm:$0xff]   ;;  %v2554_v51 = vld [vmem:[%s2865_s3 + $0x44] ss:$16 sps:$4 sm:$0xff]   ;;  %v2560_v52 = vld [vmem:[%s2865_s3 + $0x88] ss:$16 sps:$4 sm:$0xff]  }
  0x12   :  { %v2566_v53 = vld [vmem:[%s2865_s3 + $0x6c] ss:$16 sps:$4 sm:$0xff]   ;;  %v2573_v54 = vld [vmem:[%s2865_s3 + $0x40] ss:$16 sps:$4 sm:$0xff]   ;;  %v2579_v55 = vld [vmem:[%s2865_s3 + $0x24] ss:$16 sps:$4 sm:$0xff]  }
  0x13   :  { %310 = vmatpush1.bf16.msra.mxu0 %v2349_v17  ;;  %361 = vmatpush1.bf16.msra.mxu1 %v2385_v23  ;;  %v2585_v56 = vld [vmem:[%s2865_s3 + $0x68] ss:$16 sps:$4 sm:$0xff]   ;;  %v2591_v57 = vld [vmem:[%s2865_s3 + $0x4c] ss:$16 sps:$4 sm:$0xff]   ;;  %v2597_v58 = vld [vmem:[%s2865_s3 + $0x20] ss:$16 sps:$4 sm:$0xff]  }
  0x14   :  { %311 = vmatprep.subr.bf16.mxu0 %v2355_v18  ;;  %362 = vmatprep.subr.bf16.mxu1 %v2391_v24  ;;  %2876 = vst [vmem:[#allocation6_spill] sm:$0xff] %v2597_v58  ;;  %v2603_v59 = vld [vmem:[%s2865_s3 + $0x4] ss:$16 sps:$4 sm:$0xff]   ;;  %v2609_v60 = vld [vmem:[%s2865_s3 + $0x48] ss:$16 sps:$4 sm:$0xff]  }
  0x15   :  { %2877 = vst [vmem:[#allocation7_spill] sm:$0xff] %v2603_v59  ;;  %v2615_v61 = vld [vmem:[%s2865_s3 + $0x2c] ss:$16 sps:$4 sm:$0xff]   ;;  %v2621_v62 = vld [vmem:[%s2865_s3] ss:$16 sps:$4 sm:$0xff]  }
  0x16   :  { %v2628_v63 = vld [vmem:[%s2865_s3 + $0x28] ss:$16 sps:$4 sm:$0xff]  }
  0x17   :  { %312 = vmatpush1.bf16.msra.mxu0 %v2373_v21  ;;  %363 = vmatpush1.bf16.msra.mxu1 %v2409_v27 }
  0x18   :  { %313 = vmatprep.subr.bf16.mxu0 %v2378_v22  ;;  %364 = vmatprep.subr.bf16.mxu1 %v2415_v28 }
  0x1b   :  { %314 = vmatpush1.bf16.msra.mxu0 %v2397_v25  ;;  %365 = vmatpush1.bf16.msra.mxu1 %v2433_v31 }
  0x1c   :  { %315 = vmatprep.subr.bf16.mxu0 %v2403_v26  ;;  %366 = vmatprep.subr.bf16.mxu1 %v2439_v32 }
  0x1f   :  { %316 = vmatpush1.bf16.msra.mxu0 %v2421_v29  ;;  %367 = vmatpush1.bf16.msra.mxu1 %v2457_v35 }
  0x20   :  { %703 = vmatprep.subr.bf16.mxu0 %v2426_v30  ;;  %754 = vmatprep.subr.bf16.mxu1 %v2463_v36 }
  0x22   :  { %334 = vmatmul.mubr.bf16.vlgmr.msra.gmra.mxu0 %v2872_v37  ;;  %385 = vmatmul.mubr.bf16.vlgmr.msra.gmra.mxu1 %v2872_v37 }
  0x23   :  { %704 = vmatpush1.bf16.msra.mxu0 %v2445_v33  ;;  %343 = vmatprep.mubr.bf16.mxu0 %v2870_v1 }
  0x24   :  { %705 = vmatprep.subr.bf16.mxu0 %v2450_v34  ;;  %755 = vmatpush1.bf16.msra.mxu1 %v2483_v40 }
  0x25   :  { %756 = vmatprep.subr.bf16.mxu1 %v2489_v41  ;;  %394 = vmatprep.mubr.bf16.mxu1 %v2870_v1 }
  0x27   :  { %706 = vmatpush1.bf16.msra.mxu0 %v2470_v38 }
  0x28   :  { %707 = vmatprep.subr.bf16.mxu0 %v2475_v39  ;;  %757 = vmatpush1.bf16.msra.mxu1 %v2508_v44 }
  0x29   :  { %758 = vmatprep.subr.bf16.mxu1 %v2514_v45 }
  0x2a   :  { %344 = vmatmul.mubr.bf16.gmra.mxu0 %v2872_v37  ;;  %395 = vmatmul.mubr.bf16.gmra.mxu1 %v2872_v37  ;;  %v2641_v37 = vld [vmem:[%s2865_s3 + $0x8] ss:$16 sps:$4 sm:$0xff]  }
  0x2b   :  { %708 = vmatpush1.bf16.msra.mxu0 %v2495_v42  ;;  %735 = vmatprep.mubr.bf16.mxu0 %v2870_v1 }
  0x2c   :  { %709 = vmatprep.subr.bf16.mxu0 %v2500_v43  ;;  %759 = vmatpush1.bf16.msra.mxu1 %v2535_v48 }
  0x2d   :  { %760 = vmatprep.subr.bf16.mxu1 %v2541_v49  ;;  %786 = vmatprep.mubr.bf16.mxu1 %v2870_v1  ;;  %v2634_v1 = vld [vmem:[%s2865_s3 + $0xc] ss:$16 sps:$4 sm:$0xff]  }
  0x2f   :  { %710 = vmatpush1.bf16.msra.mxu0 %v2522_v46 }
  0x30   :  { %711 = vmatprep.subr.bf16.mxu0 %v2529_v47  ;;  %761 = vmatpush1.bf16.msra.mxu1 %v2560_v52 }
  0x31   :  { %762 = vmatprep.subr.bf16.mxu1 %v2566_v53 }
  0x33   :  { %712 = vmatpush1.bf16.msra.mxu0 %v2547_v50 }
  0x34   :  { %713 = vmatprep.subr.bf16.mxu0 %v2554_v51  ;;  %763 = vmatpush1.bf16.msra.mxu1 %v2585_v56 }
  0x35   :  { %764 = vmatprep.subr.bf16.mxu1 %v2591_v57 }
  0x37   :  { %714 = vmatpush1.bf16.msra.mxu0 %v2573_v54 }
  0x38   :  { %715 = vmatprep.subr.bf16.mxu0 %v2579_v55  ;;  %765 = vmatpush1.bf16.msra.mxu1 %v2609_v60 }
  0x39   :  { %766 = vmatprep.subr.bf16.mxu1 %v2615_v61 }
  0x3b   :  { %716 = vmatpush1.bf16.msra.mxu0 %v2597_v58  ;;  %v2879_v58 = vmov 0  }
  0x3c   :  { %717 = vmatprep.subr.bf16.mxu0 %v2603_v59  ;;  %767 = vmatpush1.bf16.msra.mxu1 %v2628_v63  ;;  %v2878_v59 = vmov 0.0|0.0  }
  0x3d   :  { %768 = vmatprep.subr.bf16.mxu1 %v2634_v1 }
  0x3f   :  { %718 = vmatpush1.bf16.msra.mxu0 %v2621_v62 }
  0x40   :  { %1106 = vmatprep.subr.bf16.mxu0 %v2254_v0  ;;  %769 = vmatpush1.bf16.msra.mxu1 %v2641_v37  ;;  %v89_v0 = vld [vmem:[%s2866_s0] sm:$0xff] }
  0x41   :  { %1157 = vmatprep.subr.bf16.mxu1 %v2284_v6 }
  0x42   :  { %736 = vmatmul.mubr.bf16.vlgmr.msra.gmra.mxu0 %v2878_v59 }
  0x43   :  { %745 = vmatprep.mubr.bf16.mxu0 %v2879_v58  ;;  %1107 = vmatpush1.bf16.msra.mxu0 %v2261_v2  ;;  %v95_v2 = vunpack.c.l.bf16 %v89_v0 }
  0x44   :  { %1108 = vmatprep.subr.bf16.mxu0 %v2267_v3  ;;  %787 = vmatmul.mubr.bf16.vlgmr.msra.gmra.mxu1 %v2878_v59  ;;  %v91_v3 = vld [vmem:[%s2866_s0 + $0x10] sm:$0xff] }
  0x45   :  { %796 = vmatprep.mubr.bf16.mxu1 %v2879_v58  ;;  %1158 = vmatpush1.bf16.msra.mxu1 %v2289_v7  ;;  %v99_v7 = vunpack.c.l.bf16 %v91_v3 }
  0x46   :  { %1159 = vmatprep.subr.bf16.mxu1 %v2308_v10  ;;  %v93_v10 = vld [vmem:[%s2866_s0 + $0x20] sm:$0xff] }
  0x47   :  { %1109 = vmatpush1.bf16.msra.mxu0 %v2273_v4  ;;  %v96_v4 = vunpack.c.h.bf16 %v89_v0 }
  0x48   :  { %1110 = vmatprep.subr.bf16.mxu0 %v2279_v5 }
  0x49   :  { %1160 = vmatpush1.bf16.msra.mxu1 %v2313_v11 }
  0x4a   :  { %746 = vmatmul.mubr.bf16.gmra.mxu0 %v2878_v59  ;;  %1161 = vmatprep.subr.bf16.mxu1 %v2330_v14 }
  0x4b   :  { %1111 = vmatpush1.bf16.msra.mxu0 %v2295_v8  ;;  %1138 = vmatprep.mubr.bf16.mxu0 %v2879_v58  ;;  %v90_v8 = vld [vmem:[%s2866_s0 + $0x8] sm:$0xff] }
  0x4c   :  { %1112 = vmatprep.subr.bf16.mxu0 %v2302_v9  ;;  %797 = vmatmul.mubr.bf16.gmra.mxu1 %v2878_v59  ;;  %v97_v59 = vunpack.c.l.bf16 %v90_v8 }
  0x4d   :  { %1162 = vmatpush1.bf16.msra.mxu1 %v2337_v15  ;;  %1189 = vmatprep.mubr.bf16.mxu1 %v2879_v58  ;;  %v98_v15 = vunpack.c.h.bf16 %v90_v8 }
  0x4e   :  { %1163 = vmatprep.subr.bf16.mxu1 %v2343_v16 }
  0x4f   :  { %1113 = vmatpush1.bf16.msra.mxu0 %v2320_v12 }
  0x50   :  { %1114 = vmatprep.subr.bf16.mxu0 %v2325_v13  ;;  %v100_v13 = vunpack.c.h.bf16 %v91_v3 }
  0x51   :  { %1164 = vmatpush1.bf16.msra.mxu1 %v2361_v19 }
  0x52   :  { %1165 = vmatprep.subr.bf16.mxu1 %v2367_v20  ;;  %v92_v20 = vld [vmem:[%s2866_s0 + $0x18] sm:$0xff] }
  0x53   :  { %1115 = vmatpush1.bf16.msra.mxu0 %v2349_v17 }
  0x54   :  { %1116 = vmatprep.subr.bf16.mxu0 %v2355_v18  ;;  %v103_v18 = vunpack.c.l.bf16 %v93_v10 }
  0x55   :  { %1166 = vmatpush1.bf16.msra.mxu1 %v2385_v23 }
  0x56   :  { %1167 = vmatprep.subr.bf16.mxu1 %v2391_v24  ;;  %v104_v24 = vunpack.c.h.bf16 %v93_v10 }
  0x57   :  { %1117 = vmatpush1.bf16.msra.mxu0 %v2373_v21 }
  0x58   :  { %1118 = vmatprep.subr.bf16.mxu0 %v2378_v22 }
  0x59   :  { %1168 = vmatpush1.bf16.msra.mxu1 %v2409_v27 }
  0x5a   :  { %1169 = vmatprep.subr.bf16.mxu1 %v2415_v28  ;;  %v102_v28 = vunpack.c.h.bf16 %v92_v20 }
  0x5b   :  { %1119 = vmatpush1.bf16.msra.mxu0 %v2397_v25 }
  0x5c   :  { %1120 = vmatprep.subr.bf16.mxu0 %v2403_v26 }
  0x5d   :  { %1170 = vmatpush1.bf16.msra.mxu1 %v2433_v31 }
  0x5e   :  { %1171 = vmatprep.subr.bf16.mxu1 %v2439_v32  ;;  %v94_v32 = vld [vmem:[%s2866_s0 + $0x28] sm:$0xff] }
  0x5f   :  { %1121 = vmatpush1.bf16.msra.mxu0 %v2421_v29  ;;  %v105_v8 = vunpack.c.l.bf16 %v94_v32 }
  0x60   :  { %1508 = vmatprep.subr.bf16.mxu0 %v2426_v30 }
  0x61   :  { %1172 = vmatpush1.bf16.msra.mxu1 %v2457_v35 }
  0x62   :  { %1559 = vmatprep.subr.bf16.mxu1 %v2463_v36 }
  0xe2   :  { %v335_v5 = vpop.f32.mrf.mxu0  ;;  %v386_v19 = vpop.f32.mrf.mxu1 }
  0xe3   :  { %v403_v6 = vadd.f32 %v335_v5, %v95_v2 }
  0xe4   :  { %v337_v9 = vpop.f32.mrf.mxu0  ;;  %v388_v25 = vpop.f32.mrf.mxu1 }
  0xe5   :  { %v1779_v11 = vmul.f32 -1.442695, %v403_v6  ;;  %v404_v12 = vadd.f32 %v337_v9, %v96_v4  ;;  %v406_v27 = vadd.f32 %v388_v25, %v98_v15  ;;  %v106_v6 = vunpack.c.h.bf16 %v94_v32 }
  0xe6   :  { %v339_v14 = vpop.f32.mrf.mxu0  ;;  %v390_v31 = vpop.f32.mrf.mxu1 }
  0xe7   :  { %2027 = vpow2.f32 %v1779_v11  ;;  %v1782_v16 = vmul.f32 -1.442695, %v404_v12  ;;  %v407_v17 = vadd.f32 %v339_v14, %v99_v7  ;;  %v1785_v3 = vmul.f32 -1.442695, %v406_v27 }
  0xe8   :  { %v341_v21 = vpop.f32.mrf.mxu0  ;;  %v392_v2 = vpop.f32.mrf.mxu1  ;;  %v405_v12 = vadd.f32 %v386_v19, %v97_v59  ;;  %v101_v14 = vunpack.c.l.bf16 %v92_v20 }
  0xe9   :  { %2029 = vpow2.f32 %v1782_v16  ;;  %v1780_v22 = vmul.f32 -1.442695, %v407_v17  ;;  %v408_v23 = vadd.f32 %v341_v21, %v100_v13  ;;  %v410_v4 = vadd.f32 %v392_v2, %v102_v28 }
  0xea   :  { %v345_v26 = vpop.f32.mrf.mxu0  ;;  %v396_v9 = vpop.f32.mrf.mxu1 }
  0xeb   :  { %2031 = vpow2.f32 %v1780_v22  ;;  %v1783_v29 = vmul.f32 -1.442695, %v408_v23  ;;  %v411_v30 = vadd.f32 %v345_v26, %v103_v18  ;;  %v1786_v10 = vmul.f32 -1.442695, %v410_v4 }
  0xec   :  { %v347_v35 = vpop.f32.mrf.mxu0  ;;  %v398_v13 = vpop.f32.mrf.mxu1  ;;  %v413_v19 = vadd.f32 %v396_v9, %v105_v8 }
  0xed   :  { %2033 = vpow2.f32 %v1783_v29  ;;  %v1781_v36 = vmul.f32 -1.442695, %v411_v30  ;;  %v412_v0 = vadd.f32 %v347_v35, %v104_v24  ;;  %v414_v15 = vadd.f32 %v398_v13, %v106_v6  ;;  %v1788_v30 = vld [vmem:[%s2867_s1 + $0x30] sm:$0xff] }
  0xee   :  { %v349_v5 = vpop.f32.mrf.mxu0  ;;  %v400_v16 = vpop.f32.mrf.mxu1  ;;  %v409_v24 = vadd.f32 %v390_v31, %v101_v14  ;;  %v497_v59 = vunpack.c.l.bf16 %v1788_v30 }
  0xef   :  { %2035 = vpow2.f32 %v1781_v36  ;;  %v1784_v7 = vmul.f32 -1.442695, %v412_v0  ;;  %v1787_v18 = vmul.f32 -1.442695, %v414_v15  ;;  %v1790_v0 = vld [vmem:[%s2867_s1 + $0x40] sm:$0xff] }
  0xf0   :  { %v350_v11 = vpop.f32.mrf.mxu0  ;;  %v401_v22 = vpop.f32.mrf.mxu1 }
  0xf1   :  { %2037 = vpow2.f32 %v1784_v7  ;;  %v1792_v11 = vld [vmem:[%s2867_s1 + $0x50] sm:$0xff]  ;;  %v502_v22 = vunpack.c.h.bf16 %v1790_v0 }
  0xf2   :  { %2039 = vpow2.f32 %v1785_v3  ;;  %v498_v3 = vunpack.c.h.bf16 %v1788_v30 }
  0xf3   :  { %2041 = vpow2.f32 %v1786_v10  ;;  %v501_v10 = vunpack.c.l.bf16 %v1790_v0 }
  0xf4   :  { %v2028_v17 = vpop.eup %2027  ;;  %2043 = vtanh.f32 %v405_v12 }
  0xf5   :  { %v424_v21 = vadd.f32 1.0, %v2028_v17  ;;  %2045 = vpow2.f32 %v1787_v18 }
  0xf6   :  { %v2030_v23 = vpop.eup %2029 }
  0xf7   :  { %2047 = vrcp.f32 %v424_v21  ;;  %v442_v25 = vadd.f32 1.0, %v2030_v23  ;;  %v505_v23 = vunpack.c.l.bf16 %v1792_v11 }
  0xf8   :  { %v2032_v26 = vpop.eup %2031 }
  0xf9   :  { %2049 = vrcp.f32 %v442_v25  ;;  %v425_v27 = vadd.f32 1.0, %v2032_v26 }
  0xfa   :  { %v2034_v28 = vpop.eup %2033  ;;  %2051 = vtanh.f32 %v409_v24 }
  0xfb   :  { %2053 = vrcp.f32 %v425_v27  ;;  %v443_v20 = vadd.f32 1.0, %v2034_v28  ;;  %v1789_v27 = vld [vmem:[%s2867_s1 + $0x38] sm:$0xff] }
  0xfc   :  { %v2036_v29 = vpop.eup %2035  ;;  %2055 = vtanh.f32 %v413_v19 }
  0xfd   :  { %2057 = vrcp.f32 %v443_v20  ;;  %v426_v32 = vadd.f32 1.0, %v2036_v29 }
  0xfe   :  { %v2038_v31 = vpop.eup %2037 }
  0xff   :  { %v2040_v35 = vpop.eup %2039  ;;  %2059 = vrcp.f32 %v426_v32  ;;  %v444_v36 = vadd.f32 1.0, %v2038_v31 }
 0x100   :  { %v2042_v2 = vpop.eup %2041  ;;  %v463_v5 = vadd.f32 1.0, %v2040_v35  ;;  %v506_v35 = vunpack.c.h.bf16 %v1792_v11 }
 0x101   :  { %2061 = vrcp.f32 %v444_v36  ;;  %v2044_v4 = vpop.eup %2043  ;;  %v464_v13 = vadd.f32 1.0, %v2042_v2 }
 0x102   :  { %v737_v6 = vpop.f32.mrf.mxu0  ;;  %v2046_v7 = vpop.eup %2045  ;;  %2063 = vrcp.f32 %v463_v5 }
 0x103   :  { %v805_v9 = vadd.f32 %v737_v6, %v497_v59  ;;  %v465_v18 = vadd.f32 1.0, %v2046_v7  ;;  %v1791_v7 = vld [vmem:[%s2867_s1 + $0x48] sm:$0xff] }
 0x104   :  { %v2048_v12 = vpop.eup %2047  ;;  %v739_v14 = vpop.f32.mrf.mxu0 }
 0x105   :  { %v475_v15 = vmul.f32 %v2048_v12, %v2044_v4  ;;  %v1826_v16 = vmul.f32 -1.442695, %v805_v9  ;;  %v806_v17 = vadd.f32 %v739_v14, %v498_v3  ;;  %v788_v28 = vpop.f32.mrf.mxu1  ;;  %v500_v3 = vunpack.c.h.bf16 %v1789_v27 }
 0x106   :  { %v2050_v8 = vpop.eup %2049  ;;  %v741_v21 = vpop.f32.mrf.mxu0 }
 0x107   :  { %v2052_v24 = vpop.eup %2051  ;;  %v472_v25 = vmul.f32 0.0, %v2050_v8  ;;  %2065 = vpow2.f32 %v1826_v16  ;;  %v1829_v26 = vmul.f32 -1.442695, %v806_v17  ;;  %v809_v19 = vadd.f32 %v741_v21, %v501_v10  ;;  %v790_v36 = vpop.f32.mrf.mxu1 }
 0x108   :  { %v2054_v20 = vpop.eup %2053  ;;  %2067 = vrcp.f32 %v464_v13  ;;  %v743_v29 = vpop.f32.mrf.mxu0  ;;  %v499_v13 = vunpack.c.l.bf16 %v1789_v27 }
 0x109   :  { %v2056_v30 = vpop.eup %2055  ;;  %v2717_v32 = vadd.f32 %v475_v15, %v472_v25  ;;  %2069 = vpow2.f32 %v1829_v26  ;;  %v1827_v31 = vmul.f32 -1.442695, %v809_v19  ;;  %v810_v0 = vadd.f32 %v743_v29, %v502_v22  ;;  %v792_v9 = vpop.f32.mrf.mxu1 }
 0x10a   :  { %v2058_v59 = vpop.eup %2057  ;;  %2071 = vrcp.f32 %v465_v18  ;;  %v747_v2 = vpop.f32.mrf.mxu0  ;;  %v476_v5 = vmul.f32 %v2054_v20, %v2052_v24  ;;  %v808_v22 = vadd.f32 %v790_v36, %v500_v3  ;;  %v1793_v24 = vld [vmem:[%s2867_s1 + $0x58] sm:$0xff]  ;;  %v503_v20 = vunpack.c.l.bf16 %v1791_v7 }
 0x10b   :  { %v473_v4 = vmul.f32 0.0, %v2058_v59  ;;  %2073 = vtanh.f32 %v2717_v32  ;;  %v813_v6 = vadd.f32 %v747_v2, %v505_v23  ;;  %v1830_v12 = vmul.f32 -1.442695, %v810_v0  ;;  %v794_v8 = vpop.f32.mrf.mxu1 }
 0x10c   :  { %v2060_v10 = vpop.eup %2059  ;;  %2075 = vpow2.f32 %v1827_v31  ;;  %v749_v11 = vpop.f32.mrf.mxu0  ;;  %v504_v23 = vunpack.c.h.bf16 %v1791_v7  ;;  %v508_v31 = vunpack.c.h.bf16 %v1793_v24  ;;  %v1832_v36 = vmul.f32 -1.442695, %v808_v22 }
 0x10d   :  { %v2723_v14 = vadd.f32 %v476_v5, %v473_v4  ;;  %v477_v15 = vmul.f32 %v2060_v10, %v2056_v30  ;;  %v1828_v16 = vmul.f32 -1.442695, %v813_v6  ;;  %v814_v17 = vadd.f32 %v749_v11, %v506_v35  ;;  %v798_v19 = vpop.f32.mrf.mxu1 }
 0x10e   :  { %v2062_v18 = vpop.eup %2061  ;;  %2077 = vpow2.f32 %v1830_v12  ;;  %v751_v21 = vpop.f32.mrf.mxu0  ;;  %v807_v30 = vadd.f32 %v788_v28, %v499_v13  ;;  %v812_v59 = vadd.f32 %v794_v8, %v504_v23  ;;  %v507_v2 = vunpack.c.l.bf16 %v1793_v24 }
 0x10f   :  { %v474_v25 = vmul.f32 0.0, %v2062_v18  ;;  %2079 = vtanh.f32 %v2723_v14  ;;  %v1831_v26 = vmul.f32 -1.442695, %v814_v17  ;;  %v800_v35 = vpop.f32.mrf.mxu1  ;;  %v2064_v0 = vpop.eup %2063  ;;  %v811_v5 = vadd.f32 %v792_v9, %v503_v20 }
 0x110   :  { %2081 = vpow2.f32 %v1828_v16  ;;  %v752_v27 = vpop.f32.mrf.mxu0  ;;  %v816_v12 = vadd.f32 %v800_v35, %v508_v31  ;;  %v815_v16 = vadd.f32 %v798_v19, %v507_v2 }
 0x111   :  { %v2729_v29 = vadd.f32 %v477_v15, %v474_v25  ;;  %2083 = vpow2.f32 %v1831_v26  ;;  %v802_v3 = vpop.f32.mrf.mxu1  ;;  %v1833_v15 = vmul.f32 -1.442695, %v812_v59 }
 0x112   :  { %v1834_v18 = vmul.f32 -1.442695, %v816_v12 }
 0x113   :  { %2085 = vtanh.f32 %v2729_v29  ;;  %v803_v7 = vpop.f32.mrf.mxu1 }
 0x114   :  { %v2066_v4 = vpop.eup %2065  ;;  %2087 = vtanh.f32 %v807_v30 }
 0x115   :  { %v2068_v6 = vpop.eup %2067  ;;  %v826_v10 = vadd.f32 1.0, %v2066_v4  ;;  %2089 = vpow2.f32 %v1832_v36 }
 0x116   :  { %v2070_v11 = vpop.eup %2069 }
 0x117   :  { %v2072_v28 = vpop.eup %2071  ;;  %2091 = vrcp.f32 %v826_v10  ;;  %v844_v13 = vadd.f32 1.0, %v2070_v11 }
 0x118   :  { %v2074_v17 = vpop.eup %2073  ;;  %2093 = vtanh.f32 %v811_v5 }
 0x119   :  { %v2076_v8 = vpop.eup %2075  ;;  %2095 = vrcp.f32 %v844_v13  ;;  %v484_v21 = vmul.f32 %v2074_v17, %v2064_v0 }
 0x11a   :  { %v827_v22 = vadd.f32 1.0, %v2076_v8  ;;  %2097 = vpow2.f32 %v1833_v15 }
 0x11b   :  { %v2078_v9 = vpop.eup %2077  ;;  %2099 = vtanh.f32 %v815_v16  ;;  %487 = vst [vmem:[%s2868_s4] sm:$0xff] %v484_v21 }
 0x11c   :  { %v2080_v23 = vpop.eup %2079  ;;  %2101 = vrcp.f32 %v827_v22  ;;  %v845_v24 = vadd.f32 1.0, %v2078_v9 }
 0x11d   :  { %v2082_v25 = vpop.eup %2081  ;;  %2103 = vpow2.f32 %v1834_v18  ;;  %v485_v26 = vmul.f32 %v2080_v23, %v2068_v6 }
 0x11e   :  { %v2084_v19 = vpop.eup %2083  ;;  %2105 = vrcp.f32 %v845_v24  ;;  %v828_v27 = vadd.f32 1.0, %v2082_v25 }
 0x11f   :  { %v846_v20 = vadd.f32 1.0, %v2084_v19  ;;  %488 = vst [vmem:[%s2868_s4 + $0x8] sm:$0xff] %v485_v26  ;;  %v912_v30 = vpack.c.bf16 %v485_v26, %v484_v21  ;;  %v1842_v21 = vld [vmem:[%s2866_s0 + $0x50] sm:$0xff]  ;;  %v1839_v26 = vld [vmem:[%s2866_s0 + $0x38] sm:$0xff] }
 0x120   :  { %v2086_v31 = vpop.eup %2085  ;;  %2107 = vrcp.f32 %v828_v27 }
 0x121   :  { %2109 = vrcp.f32 %v846_v20  ;;  %1139 = vmatmul.mubr.bf16.vlgmr.msra.gmra.mxu0 %v912_v30  ;;  %1190 = vmatmul.mubr.bf16.vlgmr.msra.gmra.mxu1 %v912_v30  ;;  %v486_v35 = vmul.f32 %v2086_v31, %v2072_v28  ;;  %v2088_v36 = vpop.eup %2087  ;;  %v908_v20 = vunpack.c.l.bf16 %v1842_v21  ;;  %v903_v30 = vunpack.c.h.bf16 %v1839_v26 }
 0x122   :  { %1509 = vmatpush1.bf16.msra.mxu0 %v2445_v33  ;;  %1560 = vmatpush1.bf16.msra.mxu1 %v2483_v40  ;;  %v2090_v59 = vpop.eup %2089 }
 0x123   :  { %1510 = vmatprep.subr.bf16.mxu0 %v2450_v34  ;;  %1561 = vmatprep.subr.bf16.mxu1 %v2489_v41  ;;  %489 = vst [vmem:[%s2868_s4 + $0x10] sm:$0xff] %v486_v35  ;;  %v913_v3 = vpack.c.bf16 %v486_v35, %v486_v35  ;;  %v865_v33 = vadd.f32 1.0, %v2090_v59 }
 0x124   :  { %v2092_v0 = vpop.eup %2091  ;;  %1148 = vmatprep.mubr.bf16.mxu0 %v2879_v58  ;;  %1199 = vmatprep.mubr.bf16.mxu1 %v2879_v58 }
 0x125   :  { %v2094_v2 = vpop.eup %2093  ;;  %v877_v41 = vmul.f32 %v2092_v0, %v2088_v36  ;;  %2111 = vrcp.f32 %v865_v33  ;;  %v909_v0 = vunpack.c.h.bf16 %v1842_v21 }
 0x126   :  { %v2096_v4 = vpop.eup %2095  ;;  %1511 = vmatpush1.bf16.msra.mxu0 %v2470_v38  ;;  %1562 = vmatpush1.bf16.msra.mxu1 %v2508_v44 }
 0x127   :  { %v2098_v34 = vpop.eup %2097  ;;  %v874_v40 = vmul.f32 0.0, %v2096_v4  ;;  %1512 = vmatprep.subr.bf16.mxu0 %v2475_v39  ;;  %1563 = vmatprep.subr.bf16.mxu1 %v2514_v45 }
 0x128   :  { %v2100_v5 = vpop.eup %2099  ;;  %v866_v44 = vadd.f32 1.0, %v2098_v34 }
 0x129   :  { %v2102_v6 = vpop.eup %2101  ;;  %v2751_v10 = vadd.f32 %v877_v41, %v874_v40  ;;  %1149 = vmatmul.mubr.bf16.gmra.mxu0 %v913_v3  ;;  %1200 = vmatmul.mubr.bf16.gmra.mxu1 %v913_v3 }
 0x12a   :  { %v2104_v12 = vpop.eup %2103  ;;  %1513 = vmatpush1.bf16.msra.mxu0 %v2495_v42  ;;  %1564 = vmatpush1.bf16.msra.mxu1 %v2535_v48  ;;  %v878_v45 = vmul.f32 %v2102_v6, %v2094_v2 }
 0x12b   :  { %v2106_v38 = vpop.eup %2105  ;;  %2113 = vtanh.f32 %v2751_v10  ;;  %1514 = vmatprep.subr.bf16.mxu0 %v2500_v43  ;;  %1565 = vmatprep.subr.bf16.mxu1 %v2541_v49  ;;  %v867_v11 = vadd.f32 1.0, %v2104_v12 }
 0x12c   :  { %v875_v39 = vmul.f32 0.0, %v2106_v38  ;;  %1540 = vmatprep.mubr.bf16.mxu0 %v2879_v58  ;;  %1591 = vmatprep.mubr.bf16.mxu1 %v2879_v58  ;;  %2115 = vrcp.f32 %v866_v44  ;;  %v1843_v38 = vld [vmem:[%s2866_s0 + $0x58] sm:$0xff]  ;;  %v902_v44 = vunpack.c.l.bf16 %v1839_v26 }
 0x12d   :  { %v2108_v7 = vpop.eup %2107 }
 0x12e   :  { %v2110_v15 = vpop.eup %2109  ;;  %v2760_v42 = vadd.f32 %v878_v45, %v875_v39  ;;  %v879_v48 = vmul.f32 %v2108_v7, %v2100_v5  ;;  %1515 = vmatpush1.bf16.msra.mxu0 %v2522_v46  ;;  %1566 = vmatpush1.bf16.msra.mxu1 %v2560_v52  ;;  %v2881_v52 = vld [vmem:[#allocation7_spill] sm:$0xff] }
 0x12f   :  { %v876_v28 = vmul.f32 0.0, %v2110_v15  ;;  %1516 = vmatprep.subr.bf16.mxu0 %v2529_v47  ;;  %1567 = vmatprep.subr.bf16.mxu1 %v2566_v53  ;;  %v1841_v5 = vld [vmem:[%s2866_s0 + $0x48] sm:$0xff] }
 0x130   :  { %2117 = vtanh.f32 %v2760_v42  ;;  %v907_v39 = vunpack.c.h.bf16 %v1841_v5  ;;  %v906_v15 = vunpack.c.l.bf16 %v1841_v5 }
 0x131   :  { %v2767_v43 = vadd.f32 %v879_v48, %v876_v28  ;;  %2119 = vrcp.f32 %v867_v11  ;;  %v911_v48 = vunpack.c.h.bf16 %v1843_v38 }
 0x132   :  { %1517 = vmatpush1.bf16.msra.mxu0 %v2547_v50  ;;  %1568 = vmatpush1.bf16.msra.mxu1 %v2585_v56  ;;  %v2112_v46 = vpop.eup %2111  ;;  %v2880_v50 = vld [vmem:[#allocation6_spill] sm:$0xff] }
 0x133   :  { %2121 = vtanh.f32 %v2767_v43  ;;  %1518 = vmatprep.subr.bf16.mxu0 %v2554_v51  ;;  %1569 = vmatprep.subr.bf16.mxu1 %v2591_v57 }
 0x136   :  { %1519 = vmatpush1.bf16.msra.mxu0 %v2573_v54  ;;  %1570 = vmatpush1.bf16.msra.mxu1 %v2609_v60 }
 0x137   :  { %1520 = vmatprep.subr.bf16.mxu0 %v2579_v55  ;;  %1571 = vmatprep.subr.bf16.mxu1 %v2615_v61 }
 0x138   :  { %v2114_v47 = vpop.eup %2113 }
 0x139   :  { %v886_v49 = vmul.f32 %v2114_v47, %v2112_v46  ;;  %v2116_v51 = vpop.eup %2115 }
 0x13a   :  { %1521 = vmatpush1.bf16.msra.mxu0 %v2880_v50  ;;  %1572 = vmatpush1.bf16.msra.mxu1 %v2628_v63 }
 0x13b   :  { %1522 = vmatprep.subr.bf16.mxu0 %v2881_v52  ;;  %1573 = vmatprep.subr.bf16.mxu1 %v2634_v1  ;;  %1835 = vst [vmem:[%s2869_s5 + $0x18] sm:$0xff] %v886_v49 }
 0x13d   :  { %v2118_v53 = vpop.eup %2117 }
 0x13e   :  { %v2120_v54 = vpop.eup %2119  ;;  %1523 = vmatpush1.bf16.msra.mxu0 %v2621_v62  ;;  %1574 = vmatpush1.bf16.msra.mxu1 %v2641_v37  ;;  %v887_v55 = vmul.f32 %v2118_v53, %v2116_v51  ;;  %v1838_v37 = vld [vmem:[%s2866_s0 + $0x30] sm:$0xff]  ;;  %v1840_v62 = vld [vmem:[%s2866_s0 + $0x40] sm:$0xff] }
 0x13f   :  { %v900_v61 = vunpack.c.l.bf16 %v1838_v37  ;;  %v901_v63 = vunpack.c.h.bf16 %v1838_v37  ;;  %v904_v17 = vunpack.c.l.bf16 %v1840_v62  ;;  %v905_v23 = vunpack.c.h.bf16 %v1840_v62 }
 0x140   :  { %v2122_v56 = vpop.eup %2121  ;;  %1836 = vst [vmem:[%s2869_s5 + $0x20] sm:$0xff] %v887_v55  ;;  %v1314_v57 = vpack.c.bf16 %v887_v55, %v886_v49 }
 0x141   :  { %v888_v60 = vmul.f32 %v2122_v56, %v2120_v54 }
 0x142   :  { %1541 = vmatmul.mubr.bf16.vlgmr.msra.gmra.mxu0 %v1314_v57  ;;  %1592 = vmatmul.mubr.bf16.vlgmr.msra.gmra.mxu1 %v1314_v57 }
 0x143   :  { %1550 = vmatprep.mubr.bf16.mxu0 %v2879_v58  ;;  %1601 = vmatprep.mubr.bf16.mxu1 %v2879_v58  ;;  %1837 = vst [vmem:[%s2869_s5 + $0x28] sm:$0xff] %v888_v60  ;;  %v1315_v1 = vpack.c.bf16 %v888_v60, %v888_v60 }
 0x14a   :  { %1551 = vmatmul.mubr.bf16.gmra.mxu0 %v1315_v1  ;;  %1602 = vmatmul.mubr.bf16.gmra.mxu1 %v1315_v1  ;;  %v910_v1 = vunpack.c.l.bf16 %v1843_v38 }
 0x1e1   :  { %v1140_v13 = vpop.f32.mrf.mxu0  ;;  %v1191_v16 = vpop.f32.mrf.mxu1 }
 0x1e2   :  { %v1208_v58 = vadd.f32 %v1140_v13, %v900_v61  ;;  %v1210_v49 = vadd.f32 %v1191_v16, %v902_v44 }
 0x1e3   :  { %v1142_v8 = vpop.f32.mrf.mxu0  ;;  %v1193_v18 = vpop.f32.mrf.mxu1 }
 0x1e4   :  { %v1876_v22 = vmul.f32 -1.442695, %v1208_v58  ;;  %v1209_v9 = vadd.f32 %v1142_v8, %v901_v63  ;;  %v1211_v41 = vadd.f32 %v1193_v18, %v903_v30 }
 0x1e5   :  { %v1144_v24 = vpop.f32.mrf.mxu0  ;;  %v1195_v25 = vpop.f32.mrf.mxu1 }
 0x1e6   :  { %2123 = vpow2.f32 %v1876_v22  ;;  %v1879_v19 = vmul.f32 -1.442695, %v1209_v9  ;;  %v1212_v27 = vadd.f32 %v1144_v24, %v904_v17  ;;  %v1882_v47 = vmul.f32 -1.442695, %v1211_v41  ;;  %v1296_v17 = vld [vmem:[%s2867_s1] sm:$0xff]  ;;  %v1298_v22 = vld [vmem:[%s2867_s1 + $0x10] sm:$0xff] }
 0x1e7   :  { %v1146_v31 = vpop.f32.mrf.mxu0  ;;  %v1197_v35 = vpop.f32.mrf.mxu1  ;;  %v1214_v51 = vadd.f32 %v1195_v25, %v906_v15  ;;  %v1302_v21 = vunpack.c.l.bf16 %v1296_v17 }
 0x1e8   :  { %2125 = vpow2.f32 %v1879_v19  ;;  %v1877_v36 = vmul.f32 -1.442695, %v1212_v27  ;;  %v1213_v59 = vadd.f32 %v1146_v31, %v905_v23  ;;  %v1215_v50 = vadd.f32 %v1197_v35, %v907_v39 }
 0x1e9   :  { %v1150_v2 = vpop.f32.mrf.mxu0  ;;  %v1201_v3 = vpop.f32.mrf.mxu1  ;;  %v1303_v23 = vunpack.c.h.bf16 %v1296_v17 }
 0x1ea   :  { %2127 = vpow2.f32 %v1877_v36  ;;  %v1880_v4 = vmul.f32 -1.442695, %v1213_v59  ;;  %v1216_v33 = vadd.f32 %v1150_v2, %v908_v20  ;;  %v1883_v56 = vmul.f32 -1.442695, %v1215_v50  ;;  %v1300_v59 = vld [vmem:[%s2867_s1 + $0x20] sm:$0xff] }
 0x1eb   :  { %v1152_v34 = vpop.f32.mrf.mxu0  ;;  %v1203_v40 = vpop.f32.mrf.mxu1  ;;  %v1218_v16 = vadd.f32 %v1201_v3, %v910_v1  ;;  %v1306_v20 = vunpack.c.l.bf16 %v1298_v22  ;;  %v1310_v44 = vunpack.c.l.bf16 %v1300_v59  ;;  %v1311_v15 = vunpack.c.h.bf16 %v1300_v59 }
 0x1ec   :  { %2129 = vpow2.f32 %v1880_v4  ;;  %v1878_v6 = vmul.f32 -1.442695, %v1216_v33  ;;  %v1217_v12 = vadd.f32 %v1152_v34, %v909_v0  ;;  %v1219_v53 = vadd.f32 %v1203_v40, %v911_v48 }
 0x1ed   :  { %v1154_v45 = vpop.f32.mrf.mxu0  ;;  %v1205_v7 = vpop.f32.mrf.mxu1  ;;  %v1307_v4 = vunpack.c.h.bf16 %v1298_v22 }
 0x1ee   :  { %2131 = vpow2.f32 %v1878_v6  ;;  %v1881_v11 = vmul.f32 -1.442695, %v1217_v12  ;;  %v1884_v37 = vmul.f32 -1.442695, %v1219_v53 }
 0x1ef   :  { %v1155_v28 = vpop.f32.mrf.mxu0  ;;  %v1206_v46 = vpop.f32.mrf.mxu1 }
 0x1f0   :  { %2133 = vpow2.f32 %v1881_v11 }
 0x1f1   :  { %2135 = vpow2.f32 %v1882_v47 }
 0x1f2   :  { %2137 = vtanh.f32 %v1210_v49 }
 0x1f3   :  { %v2124_v52 = vpop.eup %2123 }
 0x1f4   :  { %v1229_v54 = vadd.f32 1.0, %v2124_v52 }
 0x1f5   :  { %v2126_v55 = vpop.eup %2125 }
 0x1f6   :  { %2139 = vrcp.f32 %v1229_v54  ;;  %v1247_v57 = vadd.f32 1.0, %v2126_v55 }
 0x1f7   :  { %v2128_v60 = vpop.eup %2127  ;;  %2141 = vtanh.f32 %v1214_v51 }
 0x1f8   :  { %2143 = vrcp.f32 %v1247_v57  ;;  %v1230_v61 = vadd.f32 1.0, %v2128_v60 }
 0x1f9   :  { %v2130_v62 = vpop.eup %2129  ;;  %2145 = vpow2.f32 %v1883_v56 }
 0x1fa   :  { %2147 = vrcp.f32 %v1230_v61  ;;  %v1248_v63 = vadd.f32 1.0, %v2130_v62 }
 0x1fb   :  { %v2132_v13 = vpop.eup %2131  ;;  %2149 = vpow2.f32 %v1884_v37 }
 0x1fc   :  { %2151 = vrcp.f32 %v1248_v63  ;;  %v1231_v58 = vadd.f32 1.0, %v2132_v13 }
 0x1fd   :  { %v2134_v8 = vpop.eup %2133 }
 0x1fe   :  { %2153 = vrcp.f32 %v1231_v58  ;;  %v1249_v18 = vadd.f32 1.0, %v2134_v8  ;;  %v2136_v9 = vpop.eup %2135 }
 0x1ff   :  { %2155 = vtanh.f32 %v1218_v16  ;;  %v2138_v24 = vpop.eup %2137  ;;  %v1268_v31 = vadd.f32 1.0, %v2136_v9 }
 0x200   :  { %2157 = vrcp.f32 %v1249_v18 }
 0x202   :  { %v1542_v25 = vpop.f32.mrf.mxu0  ;;  %v2819_v26 = vpop.f32.mrf.mxu1 }
 0x203   :  { %v2140_v19 = vpop.eup %2139  ;;  %v1610_v27 = vadd.f32 %v1542_v25, %v1302_v21  ;;  %v1299_v21 = vld [vmem:[%s2867_s1 + $0x18] sm:$0xff] }
 0x204   :  { %v2142_v30 = vpop.eup %2141  ;;  %v1544_v35 = vpop.f32.mrf.mxu0  ;;  %v1280_v34 = vmul.f32 %v2140_v19, %v2138_v24  ;;  %v1309_v9 = vunpack.c.h.bf16 %v1299_v21 }
 0x205   :  { %v1595_v36 = vpop.f32.mrf.mxu1  ;;  %v2144_v0 = vpop.eup %2143  ;;  %v1920_v2 = vmul.f32 -1.442695, %v1610_v27  ;;  %v1611_v3 = vadd.f32 %v1544_v35, %v1303_v23 }
 0x206   :  { %v2146_v33 = vpop.eup %2145  ;;  %v1277_v40 = vmul.f32 %v2144_v0, %v2717_v32  ;;  %v1546_v41 = vpop.f32.mrf.mxu0  ;;  %v1297_v32 = vld [vmem:[%s2867_s1 + $0x8] sm:$0xff]  ;;  %v1308_v0 = vunpack.c.l.bf16 %v1299_v21 }
 0x207   :  { %v2825_v5 = vpop.f32.mrf.mxu1  ;;  %v2148_v6 = vpop.eup %2147  ;;  %2159 = vpow2.f32 %v1920_v2  ;;  %v1923_v12 = vmul.f32 -1.442695, %v1611_v3  ;;  %v1614_v38 = vadd.f32 %v1546_v41, %v1306_v20  ;;  %v1269_v28 = vadd.f32 1.0, %v2146_v33 }
 0x208   :  { %v2150_v39 = vpop.eup %2149  ;;  %v1283_v45 = vadd.f32 %v1280_v34, %v1277_v40  ;;  %2161 = vrcp.f32 %v1268_v31  ;;  %v1548_v7 = vpop.f32.mrf.mxu0  ;;  %v1281_v49 = vmul.f32 %v2148_v6, %v2142_v30  ;;  %v1305_v52 = vunpack.c.h.bf16 %v1297_v32  ;;  %v1301_v30 = vld [vmem:[%s2867_s1 + $0x28] sm:$0xff] }
 0x209   :  { %v1599_v11 = vpop.f32.mrf.mxu1  ;;  %v2152_v48 = vpop.eup %2151  ;;  %2163 = vpow2.f32 %v1923_v12  ;;  %v1921_v46 = vmul.f32 -1.442695, %v1614_v38  ;;  %v1615_v47 = vadd.f32 %v1548_v7, %v1307_v4  ;;  %v1270_v1 = vadd.f32 1.0, %v2150_v39 }
 0x20a   :  { %2165 = vtanh.f32 %v1283_v45  ;;  %v1278_v50 = vmul.f32 %v2152_v48, %v2723_v14  ;;  %v1552_v51 = vpop.f32.mrf.mxu0  ;;  %v1613_v58 = vadd.f32 %v1595_v36, %v1305_v52  ;;  %v1304_v18 = vunpack.c.l.bf16 %v1297_v32 }
 0x20b   :  { %v2831_v53 = vpop.f32.mrf.mxu1  ;;  %v2154_v54 = vpop.eup %2153  ;;  %v1924_v55 = vmul.f32 -1.442695, %v1615_v47  ;;  %v1618_v56 = vadd.f32 %v1552_v51, %v1310_v44  ;;  %2167 = vpow2.f32 %v1921_v46  ;;  %v1617_v20 = vadd.f32 %v1599_v11, %v1309_v9 }
 0x20c   :  { %v2156_v57 = vpop.eup %2155  ;;  %v1284_v60 = vadd.f32 %v1281_v49, %v1278_v50  ;;  %v1554_v37 = vpop.f32.mrf.mxu0  ;;  %2169 = vrcp.f32 %v1269_v28  ;;  %v1926_v19 = vmul.f32 -1.442695, %v1613_v58  ;;  %v1612_v27 = vadd.f32 %v2819_v26, %v1304_v18 }
 0x20d   :  { %v1605_v61 = vpop.f32.mrf.mxu1  ;;  %v2158_v62 = vpop.eup %2157  ;;  %v1922_v63 = vmul.f32 -1.442695, %v1618_v56  ;;  %v1619_v13 = vadd.f32 %v1554_v37, %v1311_v15  ;;  %v1282_v16 = vmul.f32 %v2156_v57, %v2154_v54  ;;  %v1313_v36 = vunpack.c.h.bf16 %v1301_v30 }
 0x20e   :  { %2171 = vtanh.f32 %v1284_v60  ;;  %v1279_v14 = vmul.f32 %v2158_v62, %v2729_v29  ;;  %v1556_v17 = vpop.f32.mrf.mxu0  ;;  %v1927_v33 = vmul.f32 -1.442695, %v1617_v20  ;;  %v1616_v6 = vadd.f32 %v2825_v5, %v1308_v0 }
 0x20f   :  { %v1607_v8 = vpop.f32.mrf.mxu1  ;;  %2173 = vpow2.f32 %v1924_v55  ;;  %v1925_v23 = vmul.f32 -1.442695, %v1619_v13  ;;  %v1621_v26 = vadd.f32 %v1605_v61, %v1313_v36  ;;  %v1312_v38 = vunpack.c.l.bf16 %v1301_v30 }
 0x210   :  { %v1285_v22 = vadd.f32 %v1282_v16, %v1279_v14  ;;  %2175 = vrcp.f32 %v1270_v1  ;;  %v1557_v24 = vpop.f32.mrf.mxu0 }
 0x211   :  { %v1608_v25 = vpop.f32.mrf.mxu1  ;;  %2177 = vpow2.f32 %v1922_v63  ;;  %v1928_v11 = vmul.f32 -1.442695, %v1621_v26  ;;  %v1620_v5 = vadd.f32 %v2831_v53, %v1312_v38 }
 0x212   :  { %2179 = vtanh.f32 %v1285_v22 }
 0x213   :  { %2181 = vpow2.f32 %v1925_v23 }
 0x214   :  { %v2160_v29 = vpop.eup %2159  ;;  %2183 = vpow2.f32 %v1926_v19 }
 0x215   :  { %v2162_v31 = vpop.eup %2161  ;;  %v1631_v35 = vadd.f32 1.0, %v2160_v29 }
 0x216   :  { %v2164_v59 = vpop.eup %2163 }
 0x217   :  { %v2166_v2 = vpop.eup %2165  ;;  %2185 = vrcp.f32 %v1631_v35  ;;  %v1649_v3 = vadd.f32 1.0, %v2164_v59 }
 0x218   :  { %v1289_v4 = vmul.f32 %v2166_v2, %v2162_v31  ;;  %2187 = vtanh.f32 %v1612_v27  ;;  %v2168_v34 = vpop.eup %2167 }
 0x219   :  { %2189 = vrcp.f32 %v1649_v3  ;;  %v2170_v40 = vpop.eup %2169  ;;  %v1632_v41 = vadd.f32 1.0, %v2168_v34 }
 0x21a   :  { %1885 = vst [vmem:[%s2868_s4 + $0x18] sm:$0xff] %v1289_v4  ;;  %2191 = vpow2.f32 %v1927_v33 }
 0x21b   :  { %v2172_v12 = vpop.eup %2171  ;;  %2193 = vrcp.f32 %v1632_v41 }
 0x21c   :  { %v2174_v44 = vpop.eup %2173  ;;  %v1290_v39 = vmul.f32 %v2172_v12, %v2170_v40  ;;  %2195 = vtanh.f32 %v1616_v6 }
 0x21d   :  { %v2176_v45 = vpop.eup %2175  ;;  %v1650_v7 = vadd.f32 1.0, %v2174_v44 }
 0x21e   :  { %v2178_v15 = vpop.eup %2177  ;;  %1886 = vst [vmem:[%s2868_s4 + $0x20] sm:$0xff] %v1290_v39 }
 0x21f   :  { %v2180_v48 = vpop.eup %2179  ;;  %2197 = vrcp.f32 %v1650_v7  ;;  %v1633_v28 = vadd.f32 1.0, %v2178_v15 }
 0x220   :  { %v1291_v32 = vmul.f32 %v2180_v48, %v2176_v45  ;;  %v2182_v46 = vpop.eup %2181  ;;  %2199 = vpow2.f32 %v1928_v11 }
 0x221   :  { %2201 = vrcp.f32 %v1633_v28  ;;  %v1651_v47 = vadd.f32 1.0, %v2182_v46  ;;  %v2184_v49 = vpop.eup %2183 }
 0x222   :  { %1887 = vst [vmem:[%s2868_s4 + $0x28] sm:$0xff] %v1291_v32  ;;  %2203 = vtanh.f32 %v1620_v5  ;;  %v1670_v54 = vadd.f32 1.0, %v2184_v49 }
 0x223   :  { %2205 = vrcp.f32 %v1651_v47 }
 0x224   :  { %v2186_v50 = vpop.eup %2185  ;;  %2207 = vrcp.f32 %v1670_v54 }
 0x225   :  { %v2188_v52 = vpop.eup %2187 }
 0x226   :  { %v2190_v51 = vpop.eup %2189  ;;  %v1682_v55 = vmul.f32 %v2188_v52, %v2186_v50 }
 0x227   :  { %v1679_v56 = vmul.f32 %v2190_v51, %v2751_v10  ;;  %v2192_v53 = vpop.eup %2191 }
 0x228   :  { %v2194_v60 = vpop.eup %2193  ;;  %v1671_v61 = vadd.f32 1.0, %v2192_v53 }
 0x229   :  { %v1685_v57 = vadd.f32 %v1682_v55, %v1679_v56  ;;  %v2196_v1 = vpop.eup %2195 }
 0x22a   :  { %v1683_v62 = vmul.f32 %v2196_v1, %v2194_v60 }
 0x22b   :  { %2209 = vtanh.f32 %v1685_v57 }
 0x22c   :  { %v2198_v37 = vpop.eup %2197  ;;  %2211 = vrcp.f32 %v1671_v61 }
 0x22d   :  { %v1680_v63 = vmul.f32 %v2198_v37, %v2760_v42  ;;  %v2200_v13 = vpop.eup %2199 }
 0x22e   :  { %v2202_v14 = vpop.eup %2201  ;;  %v1672_v8 = vadd.f32 1.0, %v2200_v13 }
 0x22f   :  { %v1686_v16 = vadd.f32 %v1683_v62, %v1680_v63  ;;  %v2204_v58 = vpop.eup %2203 }
 0x230   :  { %v2206_v17 = vpop.eup %2205  ;;  %v1684_v10 = vmul.f32 %v2204_v58, %v2202_v14 }
 0x231   :  { %2213 = vtanh.f32 %v1686_v16  ;;  %v1681_v18 = vmul.f32 %v2206_v17, %v2767_v43  ;;  %v2208_v22 = vpop.eup %2207 }
 0x232   :  { %2215 = vrcp.f32 %v1672_v8 }
 0x233   :  { %v1687_v21 = vadd.f32 %v1684_v10, %v1681_v18 }
 0x235   :  { %2217 = vtanh.f32 %v1687_v21 }
 0x238   :  { %v2210_v9 = vpop.eup %2209 }
 0x239   :  { %v1691_v23 = vmul.f32 %v2210_v9, %v2208_v22  ;;  %v2212_v42 = vpop.eup %2211 }
 0x23b   :  { %1694 = vst [vmem:[%s2869_s5] sm:$0xff] %v1691_v23 }
 0x23e   :  { %v2214_v24 = vpop.eup %2213 }
 0x23f   :  { %v1692_v25 = vmul.f32 %v2214_v24, %v2212_v42  ;;  %v2216_v19 = vpop.eup %2215 }
 0x241   :  { %1695 = vst [vmem:[%s2869_s5 + $0x8] sm:$0xff] %v1692_v25 }
 0x242   :  { %v2218_v29 = vpop.eup %2217 }
 0x243   :  { %v1693_v43 = vmul.f32 %v2218_v29, %v2216_v19 }
 0x245   :  { %1696 = vst [vmem:[%s2869_s5 + $0x10] sm:$0xff] %v1693_v43 }

</bundles_post_ra>
